<compile_context>
chip_gen: v7x
topology: tpu7x:2x2x1
jax: 0.10.0
libtpu: 0.0.40
codegen_flags: <defaults>
</compile_context>

<pallas_src>
import jax
import jax.numpy as jnp
from jax.experimental import pallas as pl
from jax.experimental.pallas import tpu as pltpu
import numpy as np

HIDDEN_DIM = 400
LATENT_DIM = 200
HIDDEN_PAD = 512          # next multiple of 128
LATENT_PAD = 256          # next multiple of 128
LEAKY_SLOPE = 0.2         # matches nn.LeakyReLU(0.2)

TB_MAX = 1024             # per-step row tile cap (fits v5e scoped VMEM w/ margin)
SUBLANE = 16              # bf16 sublane packing granularity
MXU_M = 256               # MXU M-dim on v6e/v7x


def _round_up(n, m):
    return ((n + m - 1) // m) * m


def _leaky_relu(x):
    # Valid because 0 < slope < 1: max(x, slope*x) == leaky_relu(x).
    return jnp.maximum(x, LEAKY_SLOPE * x)


def _choose_tile(B):
    """Pick (TB, B_pad): big tiles to amortize per-step overhead, >=2 (even)
    grid steps for v7x 2-TC sharding when the batch is large, minimal row
    padding, 16-row (bf16 sublane) alignment, 256-row (MXU M) alignment only
    when it costs <=64 extra padded rows."""
    steps = max(1, pl.cdiv(B, TB_MAX))
    if B >= 512:
        steps = max(steps, 2)
        if steps % 2:
            steps += 1
    tb = _round_up(pl.cdiv(B, steps), SUBLANE)
    if tb % MXU_M and (_round_up(tb, MXU_M) - tb) <= 64:
        tb = _round_up(tb, MXU_M)
    return tb, _round_up(B, tb)


def encoder_kernel(x_ref,
                   w1_ref, b1_ref,
                   w2_ref, b2_ref,
                   wh_ref, bh_ref,
                   out_ref):
    """One batch tile: two hidden layers + fused (mean || log_var) head."""
    x = x_ref[...]                                              # bf16 (TB, DIN_PAD)

    # h = LeakyReLU(x @ W1 + b1)   (f32 MXU accumulate, f32 elementwise)
    h = jnp.dot(x, w1_ref[...], preferred_element_type=jnp.float32) + b1_ref[...]
    h = _leaky_relu(h).astype(jnp.bfloat16)

    # h = LeakyReLU(h @ W2 + b2)
    h = jnp.dot(h, w2_ref[...], preferred_element_type=jnp.float32) + b2_ref[...]
    h = _leaky_relu(h).astype(jnp.bfloat16)

    # fused heads: [mean || log_var] = h @ [Wm || Wv] + [bm || bv]
    out = jnp.dot(h, wh_ref[...], preferred_element_type=jnp.float32) + bh_ref[...]
    out_ref[...] = out.astype(out_ref.dtype)


def encoder_forward(x, prep):
    """x: (B, input_dim) f32.  prep: padded/bf16 params from prepare_params."""
    B, din = x.shape
    latent = prep["latent_dim"]
    din_pad = prep["w1"].shape[0]

    TB, B_pad = _choose_tile(B)
    grid = (B_pad // TB,)

    # One fused pad (rows + feature lanes) on the bf16 copy of x.
    x_p = jnp.pad(x.astype(jnp.bfloat16), ((0, B_pad - B), (0, din_pad - din)))

    flops = 2 * B_pad * (din_pad * HIDDEN_PAD
                         + HIDDEN_PAD * HIDDEN_PAD
                         + HIDDEN_PAD * 2 * LATENT_PAD)
    bytes_accessed = (x_p.size * 2
                      + (prep["w1"].size + prep["w2"].size + prep["wh"].size) * 2
                      + (prep["b1"].size + prep["b2"].size + prep["bh"].size) * 4
                      + B_pad * 2 * LATENT_PAD * 4)

    out = pl.pallas_call(
        encoder_kernel,
        out_shape=jax.ShapeDtypeStruct((B_pad, 2 * LATENT_PAD), jnp.float32),
        grid=grid,
        in_specs=[
            pl.BlockSpec((TB, din_pad), lambda i: (i, 0)),                 # x tile
            pl.BlockSpec((din_pad, HIDDEN_PAD), lambda i: (0, 0)),         # W1 (resident)
            pl.BlockSpec((1, HIDDEN_PAD), lambda i: (0, 0)),               # b1
            pl.BlockSpec((HIDDEN_PAD, HIDDEN_PAD), lambda i: (0, 0)),      # W2
            pl.BlockSpec((1, HIDDEN_PAD), lambda i: (0, 0)),               # b2
            pl.BlockSpec((HIDDEN_PAD, 2 * LATENT_PAD), lambda i: (0, 0)),  # W_heads
            pl.BlockSpec((1, 2 * LATENT_PAD), lambda i: (0, 0)),           # b_heads
        ],
        out_specs=pl.BlockSpec((TB, 2 * LATENT_PAD), lambda i: (i, 0)),
        compiler_params=pltpu.CompilerParams(
            dimension_semantics=("parallel",),
            vmem_limit_bytes=32 * 1024 * 1024,
        ),
        cost_estimate=pl.CostEstimate(
            flops=flops, transcendentals=0, bytes_accessed=bytes_accessed),
    )(x_p,
      prep["w1"], prep["b1"],
      prep["w2"], prep["b2"],
      prep["wh"], prep["bh"])

    mean = out[:B, :latent]
    log_var = out[:B, LATENT_PAD:LATENT_PAD + latent]
    return mean, log_var


# ---------------------------------------------------------------------------
# Parameter init (mimics nn.Linear uniform +-1/sqrt(in_dim)) + padding/fusion
# ---------------------------------------------------------------------------
def init_linear(key, in_dim, out_dim):
    kw, kb = jax.random.split(key)
    bound = 1.0 / np.sqrt(in_dim)
    w = jax.random.uniform(kw, (out_dim, in_dim), jnp.float32, -bound, bound)
    b = jax.random.uniform(kb, (out_dim,), jnp.float32, -bound, bound)
    return w.T, b.reshape(1, out_dim)          # (in, out) layout, (1, out) bias


def init_encoder_params(key, input_dim, hidden_dim, latent_dim):
    k1, k2, k3, k4 = jax.random.split(key, 4)
    w1, b1 = init_linear(k1, input_dim, hidden_dim)
    w2, b2 = init_linear(k2, hidden_dim, hidden_dim)
    wm, bm = init_linear(k3, hidden_dim, latent_dim)
    wv, bv = init_linear(k4, hidden_dim, latent_dim)
    return dict(w1=w1, b1=b1, w2=w2, b2=b2, wm=wm, bm=bm, wv=wv, bv=bv)


def prepare_params(p, input_dim, hidden_dim, latent_dim):
    """Zero-pad to lane multiples (incl. input dim), fuse heads, cast to bf16."""
    din_pad = _round_up(max(input_dim, 1), 128)

    def pad2(a, r, c):
        return jnp.pad(a, ((0, r - a.shape[0]), (0, c - a.shape[1])))

    w1 = pad2(p["w1"], din_pad, HIDDEN_PAD)
    w2 = pad2(p["w2"], HIDDEN_PAD, HIDDEN_PAD)
    wm = pad2(p["wm"], HIDDEN_PAD, LATENT_PAD)
    wv = pad2(p["wv"], HIDDEN_PAD, LATENT_PAD)
    wh = jnp.concatenate([wm, wv], axis=1)                 # (DIN_PAD? no: HID_PAD, 2*LAT_PAD)

    b1 = pad2(p["b1"], 1, HIDDEN_PAD)
    b2 = pad2(p["b2"], 1, HIDDEN_PAD)
    bh = jnp.concatenate([pad2(p["bm"], 1, LATENT_PAD),
                          pad2(p["bv"], 1, LATENT_PAD)], axis=1)

    return dict(
        w1=w1.astype(jnp.bfloat16), b1=b1,                 # biases stay f32
        w2=w2.astype(jnp.bfloat16), b2=b2,
        wh=wh.astype(jnp.bfloat16), bh=bh,
        latent_dim=latent_dim,
    )


# ---------------------------------------------------------------------------
# Pure-JAX reference with identical bf16 rounding (for correctness check)
# ---------------------------------------------------------------------------
def encoder_reference(x, prep):
    latent = prep["latent_dim"]
    din = x.shape[1]
    xb = x.astype(jnp.bfloat16).astype(jnp.float32)
    w1 = prep["w1"].astype(jnp.float32)[:din]              # padded rows are zero
    w2 = prep["w2"].astype(jnp.float32)
    wh = prep["wh"].astype(jnp.float32)

    h = _leaky_relu(xb @ w1 + prep["b1"])
    h = h.astype(jnp.bfloat16).astype(jnp.float32)
    h = _leaky_relu(h @ w2 + prep["b2"])
    h = h.astype(jnp.bfloat16).astype(jnp.float32)
    out = h @ wh + prep["bh"]
    return out[:, :latent], out[:, LATENT_PAD:LATENT_PAD + latent]


if __name__ == "__main__":
    key = jax.random.PRNGKey(0)
    k_param, k_x = jax.random.split(key)

    batch = 8
    input_dim = 32  # small synthetic flattened input

    raw = init_encoder_params(k_param, input_dim, HIDDEN_DIM, LATENT_DIM)
    prep = prepare_params(raw, input_dim, HIDDEN_DIM, LATENT_DIM)
    x = jax.random.normal(k_x, (batch, input_dim), jnp.float32)

    mean, log_var = encoder_forward(x, prep)
    jax.block_until_ready((mean, log_var))

    assert mean.shape == (batch, LATENT_DIM)
    assert log_var.shape == (batch, LATENT_DIM)

    mean_ref, log_var_ref = encoder_reference(x, prep)
    np.testing.assert_allclose(np.asarray(mean), np.asarray(mean_ref),
                               rtol=1e-3, atol=1e-3)
    np.testing.assert_allclose(np.asarray(log_var), np.asarray(log_var_ref),
                               rtol=1e-3, atol=1e-3)

    print("KERNEL_OK")
</pallas_src>

<mosaic_0001>
module attributes {stable_mosaic.version = 11 : i64} {
  func.func @encoder_kernel(%arg0: i32, %arg1: memref<16x128xbf16, #tpu.memory_space<vmem>>, %arg2: memref<128x512xbf16, #tpu.memory_space<vmem>>, %arg3: memref<1x512xf32, #tpu.memory_space<vmem>>, %arg4: memref<512x512xbf16, #tpu.memory_space<vmem>>, %arg5: memref<1x512xf32, #tpu.memory_space<vmem>>, %arg6: memref<512x512xbf16, #tpu.memory_space<vmem>>, %arg7: memref<1x512xf32, #tpu.memory_space<vmem>>, %arg8: memref<16x512xf32, #tpu.memory_space<vmem>>) attributes {dimension_semantics = [#tpu.dimension_semantics<parallel>], iteration_bounds = array<i64: 1>, scalar_prefetch = 0 : i64, scratch_operands = 0 : i64, tpu.core_type = #tpu.core_type<tc>, window_params = [{transform_indices = @transform_0, window_bounds = array<i64: 16, 128>}, {pipeline_mode = #tpu.pipeline_mode<synchronous>, transform_indices = @transform_1, window_bounds = array<i64: 128, 512>}, {pipeline_mode = #tpu.pipeline_mode<synchronous>, transform_indices = @transform_2, window_bounds = array<i64: 1, 512>}, {pipeline_mode = #tpu.pipeline_mode<synchronous>, transform_indices = @transform_3, window_bounds = array<i64: 512, 512>}, {pipeline_mode = #tpu.pipeline_mode<synchronous>, transform_indices = @transform_4, window_bounds = array<i64: 1, 512>}, {pipeline_mode = #tpu.pipeline_mode<synchronous>, transform_indices = @transform_5, window_bounds = array<i64: 512, 512>}, {pipeline_mode = #tpu.pipeline_mode<synchronous>, transform_indices = @transform_6, window_bounds = array<i64: 1, 512>}, {transform_indices = @transform_7, window_bounds = array<i64: 16, 512>}]} {
    %c0 = arith.constant 0 : index
    %c0_0 = arith.constant 0 : index
    %0 = vector.load %arg1[%c0, %c0_0] : memref<16x128xbf16, #tpu.memory_space<vmem>>, vector<16x128xbf16>
    %c0_1 = arith.constant 0 : index
    %c0_2 = arith.constant 0 : index
    %1 = vector.load %arg2[%c0_1, %c0_2] : memref<128x512xbf16, #tpu.memory_space<vmem>>, vector<128x512xbf16>
    %cst = arith.constant dense<0.000000e+00> : vector<16x512xf32>
    %2 = tpu.matmul %0, %1, %cst {dimension_numbers = #tpu.dot_dimension_numbers<[1], [0], [0], [1], [0, 0, 1, 1], [], []>} : vector<16x128xbf16>, vector<128x512xbf16>, vector<16x512xf32> -> vector<16x512xf32>
    %c0_3 = arith.constant 0 : index
    %c0_4 = arith.constant 0 : index
    %3 = vector.load %arg3[%c0_3, %c0_4] : memref<1x512xf32, #tpu.memory_space<vmem>>, vector<1x512xf32>
    %4 = vector.broadcast %3 : vector<1x512xf32> to vector<16x512xf32>
    %5 = arith.addf %2, %4 : vector<16x512xf32>
    %cst_5 = arith.constant 2.000000e-01 : f32
    %6 = vector.broadcast %cst_5 : f32 to vector<16x512xf32>
    %7 = arith.mulf %6, %5 : vector<16x512xf32>
    %8 = arith.maximumf %5, %7 : vector<16x512xf32>
    %9 = arith.truncf %8 : vector<16x512xf32> to vector<16x512xbf16>
    %c0_6 = arith.constant 0 : index
    %c0_7 = arith.constant 0 : index
    %10 = vector.load %arg4[%c0_6, %c0_7] : memref<512x512xbf16, #tpu.memory_space<vmem>>, vector<512x512xbf16>
    %cst_8 = arith.constant dense<0.000000e+00> : vector<16x512xf32>
    %11 = tpu.matmul %9, %10, %cst_8 {dimension_numbers = #tpu.dot_dimension_numbers<[1], [0], [0], [1], [0, 0, 1, 1], [], []>} : vector<16x512xbf16>, vector<512x512xbf16>, vector<16x512xf32> -> vector<16x512xf32>
    %c0_9 = arith.constant 0 : index
    %c0_10 = arith.constant 0 : index
    %12 = vector.load %arg5[%c0_9, %c0_10] : memref<1x512xf32, #tpu.memory_space<vmem>>, vector<1x512xf32>
    %13 = vector.broadcast %12 : vector<1x512xf32> to vector<16x512xf32>
    %14 = arith.addf %11, %13 : vector<16x512xf32>
    %cst_11 = arith.constant 2.000000e-01 : f32
    %15 = vector.broadcast %cst_11 : f32 to vector<16x512xf32>
    %16 = arith.mulf %15, %14 : vector<16x512xf32>
    %17 = arith.maximumf %14, %16 : vector<16x512xf32>
    %18 = arith.truncf %17 : vector<16x512xf32> to vector<16x512xbf16>
    %c0_12 = arith.constant 0 : index
    %c0_13 = arith.constant 0 : index
    %19 = vector.load %arg6[%c0_12, %c0_13] : memref<512x512xbf16, #tpu.memory_space<vmem>>, vector<512x512xbf16>
    %cst_14 = arith.constant dense<0.000000e+00> : vector<16x512xf32>
    %20 = tpu.matmul %18, %19, %cst_14 {dimension_numbers = #tpu.dot_dimension_numbers<[1], [0], [0], [1], [0, 0, 1, 1], [], []>} : vector<16x512xbf16>, vector<512x512xbf16>, vector<16x512xf32> -> vector<16x512xf32>
    %c0_15 = arith.constant 0 : index
    %c0_16 = arith.constant 0 : index
    %21 = vector.load %arg7[%c0_15, %c0_16] : memref<1x512xf32, #tpu.memory_space<vmem>>, vector<1x512xf32>
    %22 = vector.broadcast %21 : vector<1x512xf32> to vector<16x512xf32>
    %23 = arith.addf %20, %22 : vector<16x512xf32>
    %c0_17 = arith.constant 0 : index
    %c0_18 = arith.constant 0 : index
    %24 = vector.load %arg8[%c0_17, %c0_18] : memref<16x512xf32, #tpu.memory_space<vmem>>, vector<16x512xf32>
    tpu.vector_store %arg8[%c0_17, %c0_18], %23 {strides = array<i32>} : memref<16x512xf32, #tpu.memory_space<vmem>>, vector<16x512xf32>,
    return
  }
  func.func @transform_0(%arg0: i32) -> (i32, i32) {
    %c0_i32 = arith.constant 0 : i32
    %c0_i32_0 = arith.constant 0 : i32
    return %arg0, %c0_i32 : i32, i32
  }
  func.func @transform_1(%arg0: i32) -> (i32, i32) {
    %c0_i32 = arith.constant 0 : i32
    %c0_i32_0 = arith.constant 0 : i32
    %c0_i32_1 = arith.constant 0 : i32
    return %c0_i32, %c0_i32_0 : i32, i32
  }
  func.func @transform_2(%arg0: i32) -> (i32, i32) {
    %c0_i32 = arith.constant 0 : i32
    %c0_i32_0 = arith.constant 0 : i32
    %c0_i32_1 = arith.constant 0 : i32
    return %c0_i32, %c0_i32_0 : i32, i32
  }
  func.func @transform_3(%arg0: i32) -> (i32, i32) {
    %c0_i32 = arith.constant 0 : i32
    %c0_i32_0 = arith.constant 0 : i32
    %c0_i32_1 = arith.constant 0 : i32
    return %c0_i32, %c0_i32_0 : i32, i32
  }
  func.func @transform_4(%arg0: i32) -> (i32, i32) {
    %c0_i32 = arith.constant 0 : i32
    %c0_i32_0 = arith.constant 0 : i32
    %c0_i32_1 = arith.constant 0 : i32
    return %c0_i32, %c0_i32_0 : i32, i32
  }
  func.func @transform_5(%arg0: i32) -> (i32, i32) {
    %c0_i32 = arith.constant 0 : i32
    %c0_i32_0 = arith.constant 0 : i32
    %c0_i32_1 = arith.constant 0 : i32
    return %c0_i32, %c0_i32_0 : i32, i32
  }
  func.func @transform_6(%arg0: i32) -> (i32, i32) {
    %c0_i32 = arith.constant 0 : i32
    %c0_i32_0 = arith.constant 0 : i32
    %c0_i32_1 = arith.constant 0 : i32
    return %c0_i32, %c0_i32_0 : i32, i32
  }
  func.func @transform_7(%arg0: i32) -> (i32, i32) {
    %c0_i32 = arith.constant 0 : i32
    %c0_i32_0 = arith.constant 0 : i32
    return %arg0, %c0_i32 : i32, i32
  }
}

</mosaic_0001>

<bundles_post_ra>
// kernel: tpu_custom_call.1
= control target key start
LH: loop header
LB: loop body
LE: loop exit
PB: predicated region body
PF: predicated region fallthrough
CT: control target
= control target key end

     0   :  { %12 = vsyncpa [#allocation3], 0  ;;  %s3431_s0 = inlined_call_operand.hbm [shape: bf16[16,128], index: 0, kind: input, shape index: {}]   ;;  %s3432_s1 = inlined_call_operand.hbm [shape: bf16[128,512], index: 1, kind: input, shape index: {}]   ;;  %s3433_s2 = inlined_call_operand.vmem [shape: f32[1,512], index: 2, kind: input, shape index: {}]   ;;  %s3434_s3 = inlined_call_operand.hbm [shape: bf16[512,512], index: 3, kind: input, shape index: {}]   ;;  %s3435_s4 = inlined_call_operand.vmem [shape: f32[1,512], index: 4, kind: input, shape index: {}]   ;;  %s3436_s5 = inlined_call_operand.hbm [shape: bf16[512,512], index: 5, kind: input, shape index: {}]   ;;  %s3437_s6 = inlined_call_operand.vmem [shape: f32[1,512], index: 6, kind: input, shape index: {}]   ;;  %s3438_s7 = inlined_call_operand.hbm [shape: f32[16,512], index: 7, kind: output, shape index: {}]  }
   0x1   :  { %13 = vsyncpa [#allocation6], 0 }
   0x2   :  { %14 = vsyncpa [#allocation9], 0 }
   0x3   :  { %15 = vsyncpa [#allocation4], 0  ;;  %s3266_s24 = smov [#allocation5]   ;;  %s3148_s28 = scalar_lea.hbm %s3432_s1, 4096 }
   0x4   :  { %s33_s25 = sshll.u32 %s3266_s24, 4  ;;  %p3149_p0 = scmp.ne.s32.totalorder %s3432_s1, %s3148_s28  ;;  %s34_s25 = int_to_ptr.vmem [resolvable:$true] %s33_s25 }
   0x5   :  { %p3152_p1 = scmp.lt.u32.totalorder %s3148_s28, %s3432_s1 }
   0x7   :  { %p3154_p2 = pnand %p3152_p1, %p3149_p0 }
   0x9   :  { %3157 = shalt.err (!%p3154_p2)
}
   0xa   :  { %s3158_s10 = scalar_lea.vmem %s34_s25, 4096  ;;  %p3163_p4 = scmp.lt.s32.totalorder %s34_s25, %s34_s25 }
   0xb   :  { %p3159_p3 = scmp.ne.s32.totalorder %s34_s25, %s3158_s10  ;;  %p3164_p5 = scmp.lt.s32.totalorder %s3158_s10, %s3158_s10 }
   0xd   :  { %p3165_p6 = por %p3164_p5, %p3163_p4 }
   0xf   :  { %p3166_p7 = pnand %p3165_p6, %p3159_p3 }
  0x11   :  { %3169 = shalt.err (!%p3166_p7)
}
  0x12   :  { %s3267_s11 = smov 256   ;;  %s3268_s12 = smov 16  }
  0x13   :  { %39 = dma.hbm_to_vmem [thread:$0]  %s3432_s1, 4096, %s34_s25, [#allocation6], %s3267_s11, %s3267_s11, %s3268_s12  }
  0x14   :  { %s3269_s15 = smov [#allocation2]   ;;  %s3170_s19 = scalar_lea.hbm %s3431_s0, 128 }
  0x15   :  { %s21_s16 = sshll.u32 %s3269_s15, 4  ;;  %p3171_p8 = scmp.ne.s32.totalorder %s3431_s0, %s3170_s19  ;;  %s22_s16 = int_to_ptr.vmem [resolvable:$true] %s21_s16 }
  0x16   :  { %p3174_p9 = scmp.lt.u32.totalorder %s3170_s19, %s3431_s0 }
  0x18   :  { %p3176_p10 = pnand %p3174_p9, %p3171_p8 }
  0x1a   :  { %3179 = shalt.err (!%p3176_p10)
}
  0x1b   :  { %s3180_s24 = scalar_lea.vmem %s22_s16, 128  ;;  %p3185_p12 = scmp.lt.s32.totalorder %s22_s16, %s22_s16 }
  0x1c   :  { %p3181_p11 = scmp.ne.s32.totalorder %s22_s16, %s3180_s24  ;;  %p3186_p13 = scmp.lt.s32.totalorder %s3180_s24, %s3180_s24 }
  0x1e   :  { %p3187_p0 = por %p3186_p13, %p3185_p12 }
  0x20   :  { %p3188_p1 = pnand %p3187_p0, %p3181_p11 }
  0x22   :  { %3191 = shalt.err (!%p3188_p1)
}
  0x23   :  { %s3270_s1 = smov 64   ;;  %s3271_s25 = smov 4  }
  0x24   :  { %27 = dma.hbm_to_vmem [thread:$0]  %s3431_s0, 128, %s22_s16, [#allocation3], %s3270_s1, %s3270_s1, %s3271_s25  }
  0x25   :  { %s3272_s28 = smov [#allocation7]   ;;  %s3273_s30 = smov [#allocation8]  }
  0x26   :  { %s47_s29 = sshll.u32 %s3272_s28, 4  ;;  %s61_s8 = sshll.u32 %s3273_s30, 4  ;;  %s48_s29 = int_to_ptr.vmem [resolvable:$true] %s47_s29  ;;  %s3345_s8 = int_to_ptr.vmem [resolvable:$true] %s61_s8 }
  0x27   :  { %s3192_s13 = scalar_lea.hbm %s3434_s3, 16384 }
  0x28   :  { %p3193_p2 = scmp.ne.s32.totalorder %s3434_s3, %s3192_s13  ;;  %p3196_p3 = scmp.lt.u32.totalorder %s3192_s13, %s3434_s3 }
  0x2a   :  { %p3198_p4 = pnand %p3196_p3, %p3193_p2 }
  0x2c   :  { %3201 = shalt.err (!%p3198_p4)
}
  0x2d   :  { %s3202_s0 = scalar_lea.vmem %s48_s29, 16384  ;;  %p3207_p6 = scmp.lt.s32.totalorder %s48_s29, %s48_s29 }
  0x2e   :  { %p3203_p5 = scmp.ne.s32.totalorder %s48_s29, %s3202_s0  ;;  %p3208_p7 = scmp.lt.s32.totalorder %s3202_s0, %s3202_s0 }
  0x30   :  { %p3209_p8 = por %p3208_p7, %p3207_p6 }
  0x32   :  { %p3210_p9 = pnand %p3209_p8, %p3203_p5 }
  0x34   :  { %3213 = shalt.err (!%p3210_p9)
}
  0x35   :  { %53 = dma.hbm_to_vmem [thread:$0]  %s3434_s3, 16384, %s48_s29, [#allocation6], %s3267_s11, %s3267_s11, %s3268_s12  }
  0x36   :  { %s3214_s22 = scalar_lea.hbm %s3436_s5, 16384 }
  0x37   :  { %p3215_p10 = scmp.ne.s32.totalorder %s3436_s5, %s3214_s22  ;;  %p3218_p11 = scmp.lt.u32.totalorder %s3214_s22, %s3436_s5 }
  0x39   :  { %p3220_p12 = pnand %p3218_p11, %p3215_p10 }
  0x3b   :  { %3223 = shalt.err (!%p3220_p12)
}
  0x3c   :  { %s3224_s26 = scalar_lea.vmem %s3345_s8, 16384  ;;  %p3229_p0 = scmp.lt.s32.totalorder %s3345_s8, %s3345_s8 }
  0x3d   :  { %p3225_p13 = scmp.ne.s32.totalorder %s3345_s8, %s3224_s26  ;;  %p3230_p1 = scmp.lt.s32.totalorder %s3224_s26, %s3224_s26 }
  0x3f   :  { %p3231_p2 = por %p3230_p1, %p3229_p0 }
  0x41   :  { %p3232_p3 = pnand %p3231_p2, %p3225_p13 }
  0x43   :  { %3235 = shalt.err (!%p3232_p3)
}
  0x44   :  { %67 = dma.hbm_to_vmem [thread:$0]  %s3436_s5, 16384, %s3345_s8, [#allocation9], %s3267_s11, %s3267_s11, %s3268_s12  }
  0x45   :  { %3258 = dma.done.wait [#allocation3], 128  }
  0x46   :  { %3259 = vsyncadd [#allocation3], 4294967168 }
  0x47   :  { %3260 = dma.done.wait [#allocation6], 20480  }
  0x48   :  { %3261 = vsyncadd [#allocation6], 4294946816 }
  0x49   :  { %3262 = dma.done.wait [#allocation9], 16384  }
  0x4a   :  { %3263 = vsyncadd [#allocation9], 4294950912  ;;  %v3274_v0 = vmov 0   ;;  %v2715_v1 = vld [vmem:[#allocation5 + $0x4] ss:$16 sps:$4 sm:$0xff]   ;;  %v2739_v29 = vld [vmem:[#allocation2] sm:$0xff]  }
  0x4b   :  { %337 = vmatprep.mubr.bf16.mxu0 %v3274_v0  ;;  %380 = vmatprep.mubr.bf16.mxu1 %v3274_v0  ;;  %v2717_v2 = vld [vmem:[#allocation5] ss:$16 sps:$4 sm:$0xff]   ;;  %v2718_v3 = vld [vmem:[#allocation5 + $0x24] ss:$16 sps:$4 sm:$0xff]   ;;  %v2740_v10 = vld [vmem:[#allocation5 + $0xc] ss:$16 sps:$4 sm:$0xff]  }
  0x4c   :  { %305 = vmatprep.subr.bf16.mxu0 %v2715_v1  ;;  %v2720_v4 = vld [vmem:[#allocation5 + $0x20] ss:$16 sps:$4 sm:$0xff]   ;;  %v2721_v5 = vld [vmem:[#allocation5 + $0x44] ss:$16 sps:$4 sm:$0xff]   ;;  %v2742_v11 = vld [vmem:[#allocation5 + $0x8] ss:$16 sps:$4 sm:$0xff]   ;;  %348 = vmatprep.subr.bf16.mxu1 %v2740_v10 }
  0x4d   :  { %306 = vmatpush1.bf16.msra.mxu0 %v2717_v2  ;;  %v2723_v6 = vld [vmem:[#allocation5 + $0x40] ss:$16 sps:$4 sm:$0xff]   ;;  %v2724_v7 = vld [vmem:[#allocation5 + $0x64] ss:$16 sps:$4 sm:$0xff]   ;;  %v2743_v12 = vld [vmem:[#allocation5 + $0x2c] ss:$16 sps:$4 sm:$0xff]   ;;  %349 = vmatpush1.bf16.msra.mxu1 %v2742_v11 }
  0x4e   :  { %307 = vmatprep.subr.bf16.mxu0 %v2718_v3  ;;  %v2726_v8 = vld [vmem:[#allocation5 + $0x60] ss:$16 sps:$4 sm:$0xff]   ;;  %v2727_v9 = vld [vmem:[#allocation5 + $0x84] ss:$16 sps:$4 sm:$0xff]   ;;  %v2745_v14 = vld [vmem:[#allocation5 + $0x28] ss:$16 sps:$4 sm:$0xff]   ;;  %350 = vmatprep.subr.bf16.mxu1 %v2743_v12 }
  0x4f   :  { %v2729_v13 = vld [vmem:[#allocation5 + $0x80] ss:$16 sps:$4 sm:$0xff]   ;;  %v2730_v15 = vld [vmem:[#allocation5 + $0xa4] ss:$16 sps:$4 sm:$0xff]   ;;  %v2746_v16 = vld [vmem:[#allocation5 + $0x4c] ss:$16 sps:$4 sm:$0xff]  }
  0x50   :  { %v2732_v17 = vld [vmem:[#allocation5 + $0xa0] ss:$16 sps:$4 sm:$0xff]   ;;  %v2748_v18 = vld [vmem:[#allocation5 + $0x48] ss:$16 sps:$4 sm:$0xff]   ;;  %v2733_v19 = vld [vmem:[#allocation5 + $0xc4] ss:$16 sps:$4 sm:$0xff]  }
  0x51   :  { %308 = vmatpush1.bf16.msra.mxu0 %v2720_v4  ;;  %351 = vmatpush1.bf16.msra.mxu1 %v2745_v14  ;;  %v2749_v20 = vld [vmem:[#allocation5 + $0x6c] ss:$16 sps:$4 sm:$0xff]   ;;  %v2735_v21 = vld [vmem:[#allocation5 + $0xc0] ss:$16 sps:$4 sm:$0xff]   ;;  %v2751_v22 = vld [vmem:[#allocation5 + $0x68] ss:$16 sps:$4 sm:$0xff]  }
  0x52   :  { %309 = vmatprep.subr.bf16.mxu0 %v2721_v5  ;;  %352 = vmatprep.subr.bf16.mxu1 %v2746_v16  ;;  %v2736_v23 = vld [vmem:[#allocation5 + $0xe4] ss:$16 sps:$4 sm:$0xff]   ;;  %v2752_v24 = vld [vmem:[#allocation5 + $0x8c] ss:$16 sps:$4 sm:$0xff]   ;;  %v2738_v25 = vld [vmem:[#allocation5 + $0xe0] ss:$16 sps:$4 sm:$0xff]  }
  0x53   :  { %v2754_v26 = vld [vmem:[#allocation5 + $0x88] ss:$16 sps:$4 sm:$0xff]   ;;  %v2755_v27 = vld [vmem:[#allocation5 + $0xac] ss:$16 sps:$4 sm:$0xff]   ;;  %v2766_v28 = vld [vmem:[#allocation7 + $0x4] ss:$16 sps:$4 sm:$0xff]  }
  0x54   :  { %v2757_v30 = vld [vmem:[#allocation5 + $0xa8] ss:$16 sps:$4 sm:$0xff]   ;;  %v2764_v31 = vld [vmem:[#allocation7] ss:$16 sps:$4 sm:$0xff]   ;;  %v2758_v32 = vld [vmem:[#allocation5 + $0xcc] ss:$16 sps:$4 sm:$0xff]  }
  0x55   :  { %310 = vmatpush1.bf16.msra.mxu0 %v2723_v6  ;;  %353 = vmatpush1.bf16.msra.mxu1 %v2748_v18  ;;  %v2772_v33 = vld [vmem:[#allocation7 + $0x24] ss:$16 sps:$4 sm:$0xff]   ;;  %v2760_v34 = vld [vmem:[#allocation5 + $0xc8] ss:$16 sps:$4 sm:$0xff]   ;;  %v2770_v35 = vld [vmem:[#allocation7 + $0x20] ss:$16 sps:$4 sm:$0xff]  }
  0x56   :  { %311 = vmatprep.subr.bf16.mxu0 %v2724_v7  ;;  %354 = vmatprep.subr.bf16.mxu1 %v2749_v20  ;;  %v2761_v36 = vld [vmem:[#allocation5 + $0xec] ss:$16 sps:$4 sm:$0xff]   ;;  %v2778_v37 = vld [vmem:[#allocation7 + $0x44] ss:$16 sps:$4 sm:$0xff]   ;;  %v2763_v38 = vld [vmem:[#allocation5 + $0xe8] ss:$16 sps:$4 sm:$0xff]  }
  0x57   :  { %v2776_v39 = vld [vmem:[#allocation7 + $0x40] ss:$16 sps:$4 sm:$0xff]   ;;  %v2769_v40 = vld [vmem:[#allocation7 + $0xc] ss:$16 sps:$4 sm:$0xff]   ;;  %v2784_v41 = vld [vmem:[#allocation7 + $0x64] ss:$16 sps:$4 sm:$0xff]  }
  0x58   :  { %v2767_v42 = vld [vmem:[#allocation7 + $0x8] ss:$16 sps:$4 sm:$0xff]   ;;  %v2782_v43 = vld [vmem:[#allocation7 + $0x60] ss:$16 sps:$4 sm:$0xff]   ;;  %v2775_v44 = vld [vmem:[#allocation7 + $0x2c] ss:$16 sps:$4 sm:$0xff]  }
  0x59   :  { %312 = vmatpush1.bf16.msra.mxu0 %v2726_v8  ;;  %355 = vmatpush1.bf16.msra.mxu1 %v2751_v22  ;;  %v2790_v45 = vld [vmem:[#allocation7 + $0x84] ss:$16 sps:$4 sm:$0xff]   ;;  %v2773_v46 = vld [vmem:[#allocation7 + $0x28] ss:$16 sps:$4 sm:$0xff]   ;;  %v2788_v47 = vld [vmem:[#allocation7 + $0x80] ss:$16 sps:$4 sm:$0xff]  }
  0x5a   :  { %313 = vmatprep.subr.bf16.mxu0 %v2727_v9  ;;  %356 = vmatprep.subr.bf16.mxu1 %v2752_v24  ;;  %v2781_v48 = vld [vmem:[#allocation7 + $0x4c] ss:$16 sps:$4 sm:$0xff]   ;;  %v2796_v49 = vld [vmem:[#allocation7 + $0xa4] ss:$16 sps:$4 sm:$0xff]   ;;  %v2779_v50 = vld [vmem:[#allocation7 + $0x48] ss:$16 sps:$4 sm:$0xff]  }
  0x5b   :  { %v2794_v51 = vld [vmem:[#allocation7 + $0xa0] ss:$16 sps:$4 sm:$0xff]   ;;  %v2787_v52 = vld [vmem:[#allocation7 + $0x6c] ss:$16 sps:$4 sm:$0xff]   ;;  %v2802_v53 = vld [vmem:[#allocation7 + $0xc4] ss:$16 sps:$4 sm:$0xff]  }
  0x5c   :  { %v2785_v54 = vld [vmem:[#allocation7 + $0x68] ss:$16 sps:$4 sm:$0xff]   ;;  %v2800_v55 = vld [vmem:[#allocation7 + $0xc0] ss:$16 sps:$4 sm:$0xff]   ;;  %v2793_v56 = vld [vmem:[#allocation7 + $0x8c] ss:$16 sps:$4 sm:$0xff]  }
  0x5d   :  { %314 = vmatpush1.bf16.msra.mxu0 %v2729_v13  ;;  %357 = vmatpush1.bf16.msra.mxu1 %v2754_v26  ;;  %v2808_v57 = vld [vmem:[#allocation7 + $0xe4] ss:$16 sps:$4 sm:$0xff]   ;;  %v2791_v58 = vld [vmem:[#allocation7 + $0x88] ss:$16 sps:$4 sm:$0xff]   ;;  %v2806_v59 = vld [vmem:[#allocation7 + $0xe0] ss:$16 sps:$4 sm:$0xff]  }
  0x5e   :  { %315 = vmatprep.subr.bf16.mxu0 %v2730_v15  ;;  %358 = vmatprep.subr.bf16.mxu1 %v2755_v27  ;;  %v2799_v60 = vld [vmem:[#allocation7 + $0xac] ss:$16 sps:$4 sm:$0xff]   ;;  %v2814_v61 = vld [vmem:[#allocation7 + $0x104] ss:$16 sps:$4 sm:$0xff]   ;;  %v2797_v62 = vld [vmem:[#allocation7 + $0xa8] ss:$16 sps:$4 sm:$0xff]  }
  0x5f   :  { %v2812_v63 = vld [vmem:[#allocation7 + $0x100] ss:$16 sps:$4 sm:$0xff]   ;;  %v2805_v0 = vld [vmem:[#allocation7 + $0xcc] ss:$16 sps:$4 sm:$0xff]   ;;  %v2820_v1 = vld [vmem:[#allocation7 + $0x124] ss:$16 sps:$4 sm:$0xff]  }
  0x60   :  { %v2803_v2 = vld [vmem:[#allocation7 + $0xc8] ss:$16 sps:$4 sm:$0xff]   ;;  %v2818_v3 = vld [vmem:[#allocation7 + $0x120] ss:$16 sps:$4 sm:$0xff]   ;;  %v2811_v4 = vld [vmem:[#allocation7 + $0xec] ss:$16 sps:$4 sm:$0xff]  }
  0x61   :  { %316 = vmatpush1.bf16.msra.mxu0 %v2732_v17  ;;  %359 = vmatpush1.bf16.msra.mxu1 %v2757_v30  ;;  %v2826_v5 = vld [vmem:[#allocation7 + $0x144] ss:$16 sps:$4 sm:$0xff]   ;;  %v2809_v6 = vld [vmem:[#allocation7 + $0xe8] ss:$16 sps:$4 sm:$0xff]   ;;  %v2824_v7 = vld [vmem:[#allocation7 + $0x140] ss:$16 sps:$4 sm:$0xff]  }
  0x62   :  { %317 = vmatprep.subr.bf16.mxu0 %v2733_v19  ;;  %360 = vmatprep.subr.bf16.mxu1 %v2758_v32  ;;  %v2817_v8 = vld [vmem:[#allocation7 + $0x10c] ss:$16 sps:$4 sm:$0xff]   ;;  %v2832_v9 = vld [vmem:[#allocation7 + $0x164] ss:$16 sps:$4 sm:$0xff]   ;;  %v2815_v10 = vld [vmem:[#allocation7 + $0x108] ss:$16 sps:$4 sm:$0xff]  }
  0x63   :  { %v2830_v11 = vld [vmem:[#allocation7 + $0x160] ss:$16 sps:$4 sm:$0xff]   ;;  %v2823_v12 = vld [vmem:[#allocation7 + $0x12c] ss:$16 sps:$4 sm:$0xff]   ;;  %v2838_v13 = vld [vmem:[#allocation7 + $0x184] ss:$16 sps:$4 sm:$0xff]  }
  0x64   :  { %v2821_v14 = vld [vmem:[#allocation7 + $0x128] ss:$16 sps:$4 sm:$0xff]   ;;  %v2836_v15 = vld [vmem:[#allocation7 + $0x180] ss:$16 sps:$4 sm:$0xff]   ;;  %v2829_v16 = vld [vmem:[#allocation7 + $0x14c] ss:$16 sps:$4 sm:$0xff]  }
  0x65   :  { %318 = vmatpush1.bf16.msra.mxu0 %v2735_v21  ;;  %361 = vmatpush1.bf16.msra.mxu1 %v2760_v34  ;;  %v2827_v17 = vld [vmem:[#allocation7 + $0x148] ss:$16 sps:$4 sm:$0xff]   ;;  %v2835_v18 = vld [vmem:[#allocation7 + $0x16c] ss:$16 sps:$4 sm:$0xff]   ;;  %v2844_v22 = vld [vmem:[#allocation7 + $0x1a4] ss:$16 sps:$4 sm:$0xff]  }
  0x66   :  { %319 = vmatprep.subr.bf16.mxu0 %v2736_v23  ;;  %362 = vmatprep.subr.bf16.mxu1 %v2761_v36  ;;  %v2833_v19 = vld [vmem:[#allocation7 + $0x168] ss:$16 sps:$4 sm:$0xff]   ;;  %v2841_v20 = vld [vmem:[#allocation7 + $0x18c] ss:$16 sps:$4 sm:$0xff]   ;;  %v2842_v24 = vld [vmem:[#allocation7 + $0x1a0] ss:$16 sps:$4 sm:$0xff]   ;;  %v119_v36 = vlaneseq }
  0x67   :  { %v2839_v21 = vld [vmem:[#allocation7 + $0x188] ss:$16 sps:$4 sm:$0xff]   ;;  %v2847_v23 = vld [vmem:[#allocation7 + $0x1ac] ss:$16 sps:$4 sm:$0xff]   ;;  %v2850_v26 = vld [vmem:[#allocation7 + $0x1c4] ss:$16 sps:$4 sm:$0xff]  }
  0x68   :  { %v2853_v27 = vld [vmem:[#allocation7 + $0x1cc] ss:$16 sps:$4 sm:$0xff]   ;;  %v2856_v30 = vld [vmem:[#allocation7 + $0x1e4] ss:$16 sps:$4 sm:$0xff]   ;;  %v2854_v32 = vld [vmem:[#allocation7 + $0x1e0] ss:$16 sps:$4 sm:$0xff]  }
  0x69   :  { %320 = vmatpush1.bf16.msra.mxu0 %v2738_v25  ;;  %363 = vmatpush1.bf16.msra.mxu1 %v2763_v38  ;;  %v2845_v25 = vld [vmem:[#allocation7 + $0x1a8] ss:$16 sps:$4 sm:$0xff]   ;;  %v2862_v34 = vld [vmem:[#allocation7 + $0x204] ss:$16 sps:$4 sm:$0xff]   ;;  %s3275_s29 = smov [#allocation10]  }
  0x6a   :  { %1201 = vmatprep.subr.bf16.mxu0 %v2766_v28  ;;  %1287 = vmatprep.subr.bf16.mxu1 %v2769_v40  ;;  %v2848_v28 = vld [vmem:[#allocation7 + $0x1c0] ss:$16 sps:$4 sm:$0xff]   ;;  %s2368_s30 = sshll.u32 %s3275_s29, 4  ;;  %s2369_s30 = int_to_ptr.vmem [resolvable:$true] %s2368_s30 }
  0x6b   :  { %p3241_p5 = scmp.lt.s32.totalorder %s2369_s30, %s2369_s30 }
  0x6c   :  { %338 = vmatmul.mubr.bf16.vlgmr.msra.gmra.mrb[0].mxu0 %v2739_v29  ;;  %381 = vmatmul.mubr.bf16.vlgmr.msra.gmra.mrb[0].mxu1 %v2739_v29  ;;  %v2851_v29 = vld [vmem:[#allocation7 + $0x1c8] ss:$16 sps:$4 sm:$0xff]  }
  0x6d   :  { %1202 = vmatpush1.bf16.msra.mxu0 %v2764_v31  ;;  %1288 = vmatpush1.bf16.msra.mxu1 %v2767_v42  ;;  %v2859_v31 = vld [vmem:[#allocation7 + $0x1ec] ss:$16 sps:$4 sm:$0xff]  }
  0x6e   :  { %1203 = vmatprep.subr.bf16.mxu0 %v2772_v33  ;;  %1289 = vmatprep.subr.bf16.mxu1 %v2775_v44  ;;  %v2857_v33 = vld [vmem:[#allocation7 + $0x1e8] ss:$16 sps:$4 sm:$0xff]  }
  0x71   :  { %1204 = vmatpush1.bf16.msra.mxu0 %v2770_v35  ;;  %1290 = vmatpush1.bf16.msra.mxu1 %v2773_v46  ;;  %v2865_v35 = vld [vmem:[#allocation7 + $0x20c] ss:$16 sps:$4 sm:$0xff]  }
  0x72   :  { %1205 = vmatprep.subr.bf16.mxu0 %v2778_v37  ;;  %1291 = vmatprep.subr.bf16.mxu1 %v2781_v48  ;;  %v120_v37 = vshrl.u32 %v119_v36, 7  ;;  %v2887_v36 = vld [vmem:[#allocation7 + $0x288] ss:$16 sps:$4 sm:$0xff]  }
  0x74   :  { %v3382_v38 = vsub.s32 0, %v120_v37  ;;  %v3387_v40 = vsub.s32 1, %v120_v37 }
  0x75   :  { %1206 = vmatpush1.bf16.msra.mxu0 %v2776_v39  ;;  %1292 = vmatpush1.bf16.msra.mxu1 %v2779_v50  ;;  %v117_v39 = vld [vmem:[%s3433_s2] sm:$0xf] }
  0x76   :  { %1207 = vmatprep.subr.bf16.mxu0 %v2784_v41  ;;  %1293 = vmatprep.subr.bf16.mxu1 %v2787_v52  ;;  %v122_v41 = vrot.slane %v117_v39, %v3382_v38  ;;  %v126_v42 = vrot.slane %v117_v39, %v3387_v40 }
  0x79   :  { %1208 = vmatpush1.bf16.msra.mxu0 %v2782_v43  ;;  %1294 = vmatpush1.bf16.msra.mxu1 %v2785_v54  ;;  %v3391_v54 = vsub.s32 2, %v120_v37 }
  0x7a   :  { %1209 = vmatprep.subr.bf16.mxu0 %v2790_v45  ;;  %1295 = vmatprep.subr.bf16.mxu1 %v2793_v56  ;;  %v3393_v56 = vsub.s32 3, %v120_v37  ;;  %v2892_v37 = vld [vmem:[#allocation7 + $0x2a4] ss:$16 sps:$4 sm:$0xff]  }
  0x7d   :  { %1210 = vmatpush1.bf16.msra.mxu0 %v2788_v47  ;;  %1296 = vmatpush1.bf16.msra.mxu1 %v2791_v58 }
  0x7e   :  { %1211 = vmatprep.subr.bf16.mxu0 %v2796_v49  ;;  %1297 = vmatprep.subr.bf16.mxu1 %v2799_v60 }
  0x81   :  { %1212 = vmatpush1.bf16.msra.mxu0 %v2794_v51  ;;  %1298 = vmatpush1.bf16.msra.mxu1 %v2797_v62  ;;  %v130_v62 = vrot.slane %v117_v39, %v3391_v54 }
  0x82   :  { %1213 = vmatprep.subr.bf16.mxu0 %v2802_v53  ;;  %1299 = vmatprep.subr.bf16.mxu1 %v2805_v0  ;;  %v2860_v0 = vld [vmem:[#allocation7 + $0x200] ss:$16 sps:$4 sm:$0xff]  }
  0x85   :  { %1214 = vmatpush1.bf16.msra.mxu0 %v2800_v55  ;;  %1300 = vmatpush1.bf16.msra.mxu1 %v2803_v2  ;;  %v134_v2 = vrot.slane %v117_v39, %v3393_v56  ;;  %v2895_v39 = vld [vmem:[#allocation7 + $0x2ac] ss:$16 sps:$4 sm:$0xff]  }
  0x86   :  { %1215 = vmatprep.subr.bf16.mxu0 %v2808_v57  ;;  %1301 = vmatprep.subr.bf16.mxu1 %v2811_v4  ;;  %v2871_v4 = vld [vmem:[#allocation7 + $0x22c] ss:$16 sps:$4 sm:$0xff]  }
  0x89   :  { %1216 = vmatpush1.bf16.msra.mxu0 %v2806_v59  ;;  %1302 = vmatpush1.bf16.msra.mxu1 %v2809_v6  ;;  %v2866_v6 = vld [vmem:[#allocation7 + $0x220] ss:$16 sps:$4 sm:$0xff]  }
  0x8a   :  { %1217 = vmatprep.subr.bf16.mxu0 %v2814_v61  ;;  %1303 = vmatprep.subr.bf16.mxu1 %v2817_v8 }
  0x8d   :  { %1218 = vmatpush1.bf16.msra.mxu0 %v2812_v63  ;;  %1304 = vmatpush1.bf16.msra.mxu1 %v2815_v10  ;;  %v2874_v10 = vld [vmem:[#allocation7 + $0x244] ss:$16 sps:$4 sm:$0xff]  }
  0x8e   :  { %1219 = vmatprep.subr.bf16.mxu0 %v2820_v1  ;;  %1305 = vmatprep.subr.bf16.mxu1 %v2823_v12  ;;  %v2863_v1 = vld [vmem:[#allocation7 + $0x208] ss:$16 sps:$4 sm:$0xff]  }
  0x91   :  { %1220 = vmatpush1.bf16.msra.mxu0 %v2818_v3  ;;  %1306 = vmatpush1.bf16.msra.mxu1 %v2821_v14  ;;  %v2868_v3 = vld [vmem:[#allocation7 + $0x224] ss:$16 sps:$4 sm:$0xff]  }
  0x92   :  { %1221 = vmatprep.subr.bf16.mxu0 %v2826_v5  ;;  %1307 = vmatprep.subr.bf16.mxu1 %v2829_v16 }
  0x95   :  { %1222 = vmatpush1.bf16.msra.mxu0 %v2824_v7  ;;  %1308 = vmatpush1.bf16.msra.mxu1 %v2827_v17 }
  0x96   :  { %1223 = vmatprep.subr.bf16.mxu0 %v2832_v9  ;;  %1309 = vmatprep.subr.bf16.mxu1 %v2835_v18  ;;  %v2869_v9 = vld [vmem:[#allocation7 + $0x228] ss:$16 sps:$4 sm:$0xff]  }
  0x99   :  { %1224 = vmatpush1.bf16.msra.mxu0 %v2830_v11  ;;  %1310 = vmatpush1.bf16.msra.mxu1 %v2833_v19 }
  0x9a   :  { %1225 = vmatprep.subr.bf16.mxu0 %v2838_v13  ;;  %1311 = vmatprep.subr.bf16.mxu1 %v2841_v20  ;;  %v2877_v13 = vld [vmem:[#allocation7 + $0x24c] ss:$16 sps:$4 sm:$0xff]  }
  0x9d   :  { %1226 = vmatpush1.bf16.msra.mxu0 %v2836_v15  ;;  %1312 = vmatpush1.bf16.msra.mxu1 %v2839_v21  ;;  %v2872_v21 = vld [vmem:[#allocation7 + $0x240] ss:$16 sps:$4 sm:$0xff]  }
  0x9e   :  { %1227 = vmatprep.subr.bf16.mxu0 %v2844_v22  ;;  %1313 = vmatprep.subr.bf16.mxu1 %v2847_v23  ;;  %v2875_v22 = vld [vmem:[#allocation7 + $0x248] ss:$16 sps:$4 sm:$0xff]  }
  0xa1   :  { %1228 = vmatpush1.bf16.msra.mxu0 %v2842_v24  ;;  %1314 = vmatpush1.bf16.msra.mxu1 %v2845_v25  ;;  %v2880_v25 = vld [vmem:[#allocation7 + $0x264] ss:$16 sps:$4 sm:$0xff]  }
  0xa2   :  { %1229 = vmatprep.subr.bf16.mxu0 %v2850_v26  ;;  %1315 = vmatprep.subr.bf16.mxu1 %v2853_v27  ;;  %v2883_v26 = vld [vmem:[#allocation7 + $0x26c] ss:$16 sps:$4 sm:$0xff]  }
  0xa5   :  { %1230 = vmatpush1.bf16.msra.mxu0 %v2848_v28  ;;  %1316 = vmatpush1.bf16.msra.mxu1 %v2851_v29 }
  0xa6   :  { %1231 = vmatprep.subr.bf16.mxu0 %v2856_v30  ;;  %1317 = vmatprep.subr.bf16.mxu1 %v2859_v31  ;;  %v2878_v30 = vld [vmem:[#allocation7 + $0x260] ss:$16 sps:$4 sm:$0xff]   ;;  %v2881_v31 = vld [vmem:[#allocation7 + $0x268] ss:$16 sps:$4 sm:$0xff]  }
  0xa9   :  { %1232 = vmatpush1.bf16.msra.mxu0 %v2854_v32  ;;  %1318 = vmatpush1.bf16.msra.mxu1 %v2857_v33  ;;  %v2886_v33 = vld [vmem:[#allocation7 + $0x284] ss:$16 sps:$4 sm:$0xff]  }
  0xaa   :  { %1244 = vmatprep.subr.bf16.mxu0 %v2862_v34  ;;  %1330 = vmatprep.subr.bf16.mxu1 %v2865_v35  ;;  %v2889_v34 = vld [vmem:[#allocation7 + $0x28c] ss:$16 sps:$4 sm:$0xff]   ;;  %v2884_v35 = vld [vmem:[#allocation7 + $0x280] ss:$16 sps:$4 sm:$0xff]  }
 0x13f   :  { %v339_v43 = vpop.f32.mrb[0].mxu0  ;;  %v382_v5 = vpop.f32.mrb[0].mxu1 }
 0x140   :  { %v340_v44 = vadd.f32 %v339_v43, %v122_v41  ;;  %v341_v45 = vpop.f32.mrb[1].mxu0  ;;  %v383_v7 = vadd.f32 %v382_v5, %v130_v62  ;;  %v384_v8 = vpop.f32.mrb[1].mxu1  ;;  %v2898_v43 = vld [vmem:[#allocation7 + $0x2c4] ss:$16 sps:$4 sm:$0xff]  }
 0x141   :  { %v342_v46 = vadd.f32 %v341_v45, %v126_v42  ;;  %v343_v47 = vpop.f32.mrb[2].mxu0  ;;  %v385_v11 = vadd.f32 %v384_v8, %v134_v2  ;;  %v386_v12 = vpop.f32.mrb[2].mxu1  ;;  %v2896_v45 = vld [vmem:[#allocation7 + $0x2c0] ss:$16 sps:$4 sm:$0xff]   ;;  %v2934_v5 = vld [vmem:[#allocation7 + $0x384] ss:$16 sps:$4 sm:$0xff]  }
 0x142   :  { %v391_v48 = vmul.f32 0.2, %v340_v44  ;;  %v344_v49 = vadd.f32 %v343_v47, %v122_v41  ;;  %v345_v50 = vpop.f32.mrb[3].mxu0  ;;  %v393_v14 = vmul.f32 0.2, %v383_v7  ;;  %v387_v15 = vadd.f32 %v386_v12, %v130_v62  ;;  %v388_v16 = vpop.f32.mrb[3].mxu1 }
 0x143   :  { %v392_v51 = vmul.f32 0.2, %v342_v46  ;;  %v346_v52 = vadd.f32 %v345_v50, %v126_v42  ;;  %v394_v17 = vmul.f32 0.2, %v385_v11  ;;  %v389_v18 = vadd.f32 %v388_v16, %v134_v2  ;;  %v2890_v41 = vld [vmem:[#allocation7 + $0x2a0] ss:$16 sps:$4 sm:$0xff]  }
 0x144   :  { %v395_v53 = vmul.f32 0.2, %v344_v49  ;;  %v399_v57 = vmax.f32 %v340_v44, %v391_v48  ;;  %v401_v19 = vmax.f32 %v383_v7, %v393_v14  ;;  %v397_v20 = vmul.f32 0.2, %v387_v15  ;;  %v2893_v42 = vld [vmem:[#allocation7 + $0x2a8] ss:$16 sps:$4 sm:$0xff]  }
 0x145   :  { %v396_v55 = vmul.f32 0.2, %v346_v52  ;;  %v400_v59 = vmax.f32 %v342_v46, %v392_v51  ;;  %v402_v23 = vmax.f32 %v385_v11, %v394_v17  ;;  %v398_v24 = vmul.f32 0.2, %v389_v18  ;;  %v2901_v44 = vld [vmem:[#allocation7 + $0x2cc] ss:$16 sps:$4 sm:$0xff]  }
 0x146   :  { %v403_v58 = vmax.f32 %v344_v49, %v395_v53  ;;  %v405_v27 = vmax.f32 %v387_v15, %v397_v20  ;;  %v2899_v46 = vld [vmem:[#allocation7 + $0x2c8] ss:$16 sps:$4 sm:$0xff]   ;;  %v2904_v47 = vld [vmem:[#allocation7 + $0x2e4] ss:$16 sps:$4 sm:$0xff]   ;;  %v2907_v48 = vld [vmem:[#allocation7 + $0x2ec] ss:$16 sps:$4 sm:$0xff]  }
 0x147   :  { %v404_v60 = vmax.f32 %v346_v52, %v396_v55  ;;  %v406_v28 = vmax.f32 %v389_v18, %v398_v24  ;;  %v2902_v49 = vld [vmem:[#allocation7 + $0x2e0] ss:$16 sps:$4 sm:$0xff]   ;;  %v2905_v50 = vld [vmem:[#allocation7 + $0x2e8] ss:$16 sps:$4 sm:$0xff]   ;;  %v2910_v51 = vld [vmem:[#allocation7 + $0x304] ss:$16 sps:$4 sm:$0xff]  }
 0x148   :  { %v407_v61 = vpack.c.bf16 %v403_v58, %v399_v57  ;;  %v3397_v29 = vpack.c.bf16 %v405_v27, %v401_v19  ;;  %v2913_v52 = vld [vmem:[#allocation7 + $0x30c] ss:$16 sps:$4 sm:$0xff]   ;;  %v2908_v53 = vld [vmem:[#allocation7 + $0x300] ss:$16 sps:$4 sm:$0xff]   ;;  %v2911_v55 = vld [vmem:[#allocation7 + $0x308] ss:$16 sps:$4 sm:$0xff]  }
 0x149   :  { %v408_v63 = vpack.c.bf16 %v404_v60, %v400_v59  ;;  %v410_v32 = vpack.c.bf16 %v406_v28, %v402_v23  ;;  %v2916_v57 = vld [vmem:[#allocation7 + $0x324] ss:$16 sps:$4 sm:$0xff]   ;;  %v2919_v58 = vld [vmem:[#allocation7 + $0x32c] ss:$16 sps:$4 sm:$0xff]   ;;  %v2914_v59 = vld [vmem:[#allocation7 + $0x320] ss:$16 sps:$4 sm:$0xff]  }
 0x14a   :  { %v2917_v60 = vld [vmem:[#allocation7 + $0x328] ss:$16 sps:$4 sm:$0xff]   ;;  %v2925_v62 = vld [vmem:[#allocation7 + $0x34c] ss:$16 sps:$4 sm:$0xff]   ;;  %v2932_v7 = vld [vmem:[#allocation7 + $0x380] ss:$16 sps:$4 sm:$0xff]  }
 0x14b   :  { %1233 = vmatprep.mubr.bf16.mxu0 %v408_v63  ;;  %1319 = vmatprep.mubr.bf16.mxu1 %v408_v63  ;;  %v2920_v63 = vld [vmem:[#allocation7 + $0x340] ss:$16 sps:$4 sm:$0xff]   ;;  %v2931_v2 = vld [vmem:[#allocation7 + $0x36c] ss:$16 sps:$4 sm:$0xff]   ;;  %v2935_v8 = vld [vmem:[#allocation7 + $0x388] ss:$16 sps:$4 sm:$0xff]  }
 0x14c   :  { %1234 = vmatmul.mubr.bf16.vlgmr.msra.gmra.mrb[4].mxu0 %v407_v61  ;;  %1320 = vmatmul.mubr.bf16.vlgmr.msra.gmra.mrb[4].mxu1 %v407_v61  ;;  %v2922_v61 = vld [vmem:[#allocation7 + $0x344] ss:$16 sps:$4 sm:$0xff]   ;;  %v2938_v11 = vld [vmem:[#allocation7 + $0x3a0] ss:$16 sps:$4 sm:$0xff]   ;;  %v2941_v12 = vld [vmem:[#allocation7 + $0x3a8] ss:$16 sps:$4 sm:$0xff]  }
 0x14d   :  { %1245 = vmatpush1.bf16.msra.mxu0 %v2860_v0  ;;  %1331 = vmatpush1.bf16.msra.mxu1 %v2863_v1  ;;  %v2923_v0 = vld [vmem:[#allocation7 + $0x348] ss:$16 sps:$4 sm:$0xff]   ;;  %v2928_v1 = vld [vmem:[#allocation7 + $0x364] ss:$16 sps:$4 sm:$0xff]   ;;  %v2949_v14 = vld [vmem:[#allocation7 + $0x3cc] ss:$16 sps:$4 sm:$0xff]  }
 0x14e   :  { %1246 = vmatprep.subr.bf16.mxu0 %v2868_v3  ;;  %1332 = vmatprep.subr.bf16.mxu1 %v2871_v4  ;;  %v2926_v3 = vld [vmem:[#allocation7 + $0x360] ss:$16 sps:$4 sm:$0xff]   ;;  %v2929_v4 = vld [vmem:[#allocation7 + $0x368] ss:$16 sps:$4 sm:$0xff]   ;;  %v2952_v17 = vld [vmem:[#allocation7 + $0x3e4] ss:$16 sps:$4 sm:$0xff]  }
 0x14f   :  { %1276 = vmatprep.mubr.bf16.mxu0 %v410_v32  ;;  %1362 = vmatprep.mubr.bf16.mxu1 %v410_v32  ;;  %v2944_v15 = vld [vmem:[#allocation7 + $0x3c0] ss:$16 sps:$4 sm:$0xff]   ;;  %v2947_v16 = vld [vmem:[#allocation7 + $0x3c8] ss:$16 sps:$4 sm:$0xff]   ;;  %v2955_v18 = vld [vmem:[#allocation7 + $0x3ec] ss:$16 sps:$4 sm:$0xff]  }
 0x150   :  { %v2950_v19 = vld [vmem:[#allocation7 + $0x3e0] ss:$16 sps:$4 sm:$0xff]   ;;  %v2953_v20 = vld [vmem:[#allocation7 + $0x3e8] ss:$16 sps:$4 sm:$0xff]  }
 0x151   :  { %1247 = vmatpush1.bf16.msra.mxu0 %v2866_v6  ;;  %1333 = vmatpush1.bf16.msra.mxu1 %v2869_v9  ;;  %v2937_v6 = vld [vmem:[#allocation7 + $0x38c] ss:$16 sps:$4 sm:$0xff]   ;;  %v2940_v9 = vld [vmem:[#allocation7 + $0x3a4] ss:$16 sps:$4 sm:$0xff]   ;;  %v2956_v23 = vld [vmem:[#allocation8] ss:$16 sps:$4 sm:$0xff]  }
 0x152   :  { %1248 = vmatprep.subr.bf16.mxu0 %v2874_v10  ;;  %1334 = vmatprep.subr.bf16.mxu1 %v2877_v13  ;;  %v2943_v10 = vld [vmem:[#allocation7 + $0x3ac] ss:$16 sps:$4 sm:$0xff]   ;;  %v2946_v13 = vld [vmem:[#allocation7 + $0x3c4] ss:$16 sps:$4 sm:$0xff]   ;;  %v2959_v24 = vld [vmem:[#allocation8 + $0x8] ss:$16 sps:$4 sm:$0xff]  }
 0x153   :  { %v2962_v27 = vld [vmem:[#allocation8 + $0x20] ss:$16 sps:$4 sm:$0xff]   ;;  %v2965_v28 = vld [vmem:[#allocation8 + $0x28] ss:$16 sps:$4 sm:$0xff]  }
 0x154   :  { %v2968_v32 = vld [vmem:[#allocation8 + $0x40] ss:$16 sps:$4 sm:$0xff]  }
 0x155   :  { %1249 = vmatpush1.bf16.msra.mxu0 %v2872_v21  ;;  %1335 = vmatpush1.bf16.msra.mxu1 %v2875_v22  ;;  %v2958_v21 = vld [vmem:[#allocation8 + $0x4] ss:$16 sps:$4 sm:$0xff]   ;;  %v2961_v22 = vld [vmem:[#allocation8 + $0xc] ss:$16 sps:$4 sm:$0xff]  }
 0x156   :  { %1250 = vmatprep.subr.bf16.mxu0 %v2880_v25  ;;  %1336 = vmatprep.subr.bf16.mxu1 %v2883_v26  ;;  %v2964_v25 = vld [vmem:[#allocation8 + $0x24] ss:$16 sps:$4 sm:$0xff]   ;;  %v2967_v26 = vld [vmem:[#allocation8 + $0x2c] ss:$16 sps:$4 sm:$0xff]  }
 0x159   :  { %1251 = vmatpush1.bf16.msra.mxu0 %v2878_v30  ;;  %1337 = vmatpush1.bf16.msra.mxu1 %v2881_v31  ;;  %v2970_v30 = vld [vmem:[#allocation8 + $0x44] ss:$16 sps:$4 sm:$0xff]   ;;  %v2973_v31 = vld [vmem:[#allocation8 + $0x4c] ss:$16 sps:$4 sm:$0xff]  }
 0x15a   :  { %1252 = vmatprep.subr.bf16.mxu0 %v2886_v33  ;;  %1338 = vmatprep.subr.bf16.mxu1 %v2889_v34  ;;  %v2971_v33 = vld [vmem:[#allocation8 + $0x48] ss:$16 sps:$4 sm:$0xff]   ;;  %v2976_v34 = vld [vmem:[#allocation8 + $0x64] ss:$16 sps:$4 sm:$0xff]  }
 0x15d   :  { %1253 = vmatpush1.bf16.msra.mxu0 %v2884_v35  ;;  %1339 = vmatpush1.bf16.msra.mxu1 %v2887_v36  ;;  %v2979_v35 = vld [vmem:[#allocation8 + $0x6c] ss:$16 sps:$4 sm:$0xff]   ;;  %v2974_v36 = vld [vmem:[#allocation8 + $0x60] ss:$16 sps:$4 sm:$0xff]  }
 0x15e   :  { %1254 = vmatprep.subr.bf16.mxu0 %v2892_v37  ;;  %1340 = vmatprep.subr.bf16.mxu1 %v2895_v39  ;;  %v2982_v37 = vld [vmem:[#allocation8 + $0x84] ss:$16 sps:$4 sm:$0xff]   ;;  %v2985_v39 = vld [vmem:[#allocation8 + $0x8c] ss:$16 sps:$4 sm:$0xff]  }
 0x161   :  { %1255 = vmatpush1.bf16.msra.mxu0 %v2890_v41  ;;  %1341 = vmatpush1.bf16.msra.mxu1 %v2893_v42  ;;  %v2980_v41 = vld [vmem:[#allocation8 + $0x80] ss:$16 sps:$4 sm:$0xff]   ;;  %v2983_v42 = vld [vmem:[#allocation8 + $0x88] ss:$16 sps:$4 sm:$0xff]  }
 0x162   :  { %1256 = vmatprep.subr.bf16.mxu0 %v2898_v43  ;;  %1342 = vmatprep.subr.bf16.mxu1 %v2901_v44  ;;  %v2988_v43 = vld [vmem:[#allocation8 + $0xa4] ss:$16 sps:$4 sm:$0xff]   ;;  %v2991_v44 = vld [vmem:[#allocation8 + $0xac] ss:$16 sps:$4 sm:$0xff]  }
 0x165   :  { %1257 = vmatpush1.bf16.msra.mxu0 %v2896_v45  ;;  %1343 = vmatpush1.bf16.msra.mxu1 %v2899_v46  ;;  %v2986_v45 = vld [vmem:[#allocation8 + $0xa0] ss:$16 sps:$4 sm:$0xff]   ;;  %v2989_v46 = vld [vmem:[#allocation8 + $0xa8] ss:$16 sps:$4 sm:$0xff]  }
 0x166   :  { %1258 = vmatprep.subr.bf16.mxu0 %v2904_v47  ;;  %1344 = vmatprep.subr.bf16.mxu1 %v2907_v48  ;;  %v2994_v47 = vld [vmem:[#allocation8 + $0xc4] ss:$16 sps:$4 sm:$0xff]   ;;  %v2997_v48 = vld [vmem:[#allocation8 + $0xcc] ss:$16 sps:$4 sm:$0xff]  }
 0x169   :  { %1259 = vmatpush1.bf16.msra.mxu0 %v2902_v49  ;;  %1345 = vmatpush1.bf16.msra.mxu1 %v2905_v50  ;;  %v2992_v49 = vld [vmem:[#allocation8 + $0xc0] ss:$16 sps:$4 sm:$0xff]   ;;  %v2995_v50 = vld [vmem:[#allocation8 + $0xc8] ss:$16 sps:$4 sm:$0xff]  }
 0x16a   :  { %1260 = vmatprep.subr.bf16.mxu0 %v2910_v51  ;;  %1346 = vmatprep.subr.bf16.mxu1 %v2913_v52  ;;  %v3000_v51 = vld [vmem:[#allocation8 + $0xe4] ss:$16 sps:$4 sm:$0xff]   ;;  %v3003_v52 = vld [vmem:[#allocation8 + $0xec] ss:$16 sps:$4 sm:$0xff]  }
 0x16d   :  { %1261 = vmatpush1.bf16.msra.mxu0 %v2908_v53  ;;  %1347 = vmatpush1.bf16.msra.mxu1 %v2911_v55  ;;  %v2998_v53 = vld [vmem:[#allocation8 + $0xe0] ss:$16 sps:$4 sm:$0xff]   ;;  %v3001_v55 = vld [vmem:[#allocation8 + $0xe8] ss:$16 sps:$4 sm:$0xff]  }
 0x16e   :  { %1262 = vmatprep.subr.bf16.mxu0 %v2916_v57  ;;  %1348 = vmatprep.subr.bf16.mxu1 %v2919_v58  ;;  %v3006_v57 = vld [vmem:[#allocation8 + $0x104] ss:$16 sps:$4 sm:$0xff]   ;;  %v3009_v58 = vld [vmem:[#allocation8 + $0x10c] ss:$16 sps:$4 sm:$0xff]  }
 0x171   :  { %1263 = vmatpush1.bf16.msra.mxu0 %v2914_v59  ;;  %1349 = vmatpush1.bf16.msra.mxu1 %v2917_v60  ;;  %v3004_v59 = vld [vmem:[#allocation8 + $0x100] ss:$16 sps:$4 sm:$0xff]   ;;  %v3007_v60 = vld [vmem:[#allocation8 + $0x108] ss:$16 sps:$4 sm:$0xff]  }
 0x172   :  { %1264 = vmatprep.subr.bf16.mxu0 %v2922_v61  ;;  %1350 = vmatprep.subr.bf16.mxu1 %v2925_v62  ;;  %v3012_v61 = vld [vmem:[#allocation8 + $0x124] ss:$16 sps:$4 sm:$0xff]   ;;  %v3015_v62 = vld [vmem:[#allocation8 + $0x12c] ss:$16 sps:$4 sm:$0xff]  }
 0x175   :  { %1265 = vmatpush1.bf16.msra.mxu0 %v2920_v63  ;;  %1351 = vmatpush1.bf16.msra.mxu1 %v2923_v0  ;;  %v3010_v63 = vld [vmem:[#allocation8 + $0x120] ss:$16 sps:$4 sm:$0xff]   ;;  %v3013_v0 = vld [vmem:[#allocation8 + $0x128] ss:$16 sps:$4 sm:$0xff]  }
 0x176   :  { %1266 = vmatprep.subr.bf16.mxu0 %v2928_v1  ;;  %1352 = vmatprep.subr.bf16.mxu1 %v2931_v2  ;;  %v3018_v1 = vld [vmem:[#allocation8 + $0x144] ss:$16 sps:$4 sm:$0xff]   ;;  %v3021_v2 = vld [vmem:[#allocation8 + $0x14c] ss:$16 sps:$4 sm:$0xff]  }
 0x179   :  { %1267 = vmatpush1.bf16.msra.mxu0 %v2926_v3  ;;  %1353 = vmatpush1.bf16.msra.mxu1 %v2929_v4  ;;  %v3016_v3 = vld [vmem:[#allocation8 + $0x140] ss:$16 sps:$4 sm:$0xff]   ;;  %v3019_v4 = vld [vmem:[#allocation8 + $0x148] ss:$16 sps:$4 sm:$0xff]  }
 0x17a   :  { %1268 = vmatprep.subr.bf16.mxu0 %v2934_v5  ;;  %1354 = vmatprep.subr.bf16.mxu1 %v2937_v6  ;;  %v3024_v5 = vld [vmem:[#allocation8 + $0x164] ss:$16 sps:$4 sm:$0xff]   ;;  %v3027_v6 = vld [vmem:[#allocation8 + $0x16c] ss:$16 sps:$4 sm:$0xff]  }
 0x17d   :  { %1269 = vmatpush1.bf16.msra.mxu0 %v2932_v7  ;;  %1355 = vmatpush1.bf16.msra.mxu1 %v2935_v8  ;;  %v3022_v7 = vld [vmem:[#allocation8 + $0x160] ss:$16 sps:$4 sm:$0xff]   ;;  %v3025_v8 = vld [vmem:[#allocation8 + $0x168] ss:$16 sps:$4 sm:$0xff]  }
 0x17e   :  { %1270 = vmatprep.subr.bf16.mxu0 %v2940_v9  ;;  %1356 = vmatprep.subr.bf16.mxu1 %v2943_v10  ;;  %v3030_v9 = vld [vmem:[#allocation8 + $0x184] ss:$16 sps:$4 sm:$0xff]   ;;  %v3033_v10 = vld [vmem:[#allocation8 + $0x18c] ss:$16 sps:$4 sm:$0xff]  }
 0x181   :  { %1271 = vmatpush1.bf16.msra.mxu0 %v2938_v11  ;;  %1357 = vmatpush1.bf16.msra.mxu1 %v2941_v12  ;;  %v3028_v11 = vld [vmem:[#allocation8 + $0x180] ss:$16 sps:$4 sm:$0xff]   ;;  %v3031_v12 = vld [vmem:[#allocation8 + $0x188] ss:$16 sps:$4 sm:$0xff]  }
 0x182   :  { %1272 = vmatprep.subr.bf16.mxu0 %v2946_v13  ;;  %1358 = vmatprep.subr.bf16.mxu1 %v2949_v14  ;;  %v3036_v13 = vld [vmem:[#allocation8 + $0x1a4] ss:$16 sps:$4 sm:$0xff]   ;;  %v3039_v14 = vld [vmem:[#allocation8 + $0x1ac] ss:$16 sps:$4 sm:$0xff]  }
 0x185   :  { %1273 = vmatpush1.bf16.msra.mxu0 %v2944_v15  ;;  %1359 = vmatpush1.bf16.msra.mxu1 %v2947_v16  ;;  %v3034_v15 = vld [vmem:[#allocation8 + $0x1a0] ss:$16 sps:$4 sm:$0xff]   ;;  %v3037_v16 = vld [vmem:[#allocation8 + $0x1a8] ss:$16 sps:$4 sm:$0xff]  }
 0x186   :  { %1274 = vmatprep.subr.bf16.mxu0 %v2952_v17  ;;  %1360 = vmatprep.subr.bf16.mxu1 %v2955_v18  ;;  %v3042_v17 = vld [vmem:[#allocation8 + $0x1c4] ss:$16 sps:$4 sm:$0xff]   ;;  %v3045_v18 = vld [vmem:[#allocation8 + $0x1cc] ss:$16 sps:$4 sm:$0xff]  }
 0x189   :  { %1275 = vmatpush1.bf16.msra.mxu0 %v2950_v19  ;;  %1361 = vmatpush1.bf16.msra.mxu1 %v2953_v20  ;;  %v3040_v19 = vld [vmem:[#allocation8 + $0x1c0] ss:$16 sps:$4 sm:$0xff]   ;;  %v3043_v20 = vld [vmem:[#allocation8 + $0x1c8] ss:$16 sps:$4 sm:$0xff]  }
 0x18a   :  { %2183 = vmatprep.subr.bf16.mxu0 %v2958_v21  ;;  %2269 = vmatprep.subr.bf16.mxu1 %v2961_v22  ;;  %v3048_v21 = vld [vmem:[#allocation8 + $0x1e4] ss:$16 sps:$4 sm:$0xff]   ;;  %v3051_v22 = vld [vmem:[#allocation8 + $0x1ec] ss:$16 sps:$4 sm:$0xff]  }
 0x18c   :  { %1277 = vmatmul.mubr.bf16.vlgmr.msra.gmra.mrb[4].mxu0 %v3397_v29  ;;  %1363 = vmatmul.mubr.bf16.vlgmr.msra.gmra.mrb[4].mxu1 %v3397_v29  ;;  %v2977_v29 = vld [vmem:[#allocation8 + $0x68] ss:$16 sps:$4 sm:$0xff]  }
 0x18d   :  { %2184 = vmatpush1.bf16.msra.mxu0 %v2956_v23  ;;  %2270 = vmatpush1.bf16.msra.mxu1 %v2959_v24  ;;  %v3046_v23 = vld [vmem:[#allocation8 + $0x1e0] ss:$16 sps:$4 sm:$0xff]   ;;  %v3049_v24 = vld [vmem:[#allocation8 + $0x1e8] ss:$16 sps:$4 sm:$0xff]  }
 0x18e   :  { %2185 = vmatprep.subr.bf16.mxu0 %v2964_v25  ;;  %2271 = vmatprep.subr.bf16.mxu1 %v2967_v26  ;;  %v3054_v25 = vld [vmem:[#allocation8 + $0x204] ss:$16 sps:$4 sm:$0xff]   ;;  %v3057_v26 = vld [vmem:[#allocation8 + $0x20c] ss:$16 sps:$4 sm:$0xff]  }
 0x191   :  { %2186 = vmatpush1.bf16.msra.mxu0 %v2962_v27  ;;  %2272 = vmatpush1.bf16.msra.mxu1 %v2965_v28  ;;  %v539_v27 = vld [vmem:[%s3435_s4] sm:$0xf] }
 0x192   :  { %2187 = vmatprep.subr.bf16.mxu0 %v2970_v30  ;;  %2273 = vmatprep.subr.bf16.mxu1 %v2973_v31  ;;  %v544_v28 = vrot.slane %v539_v27, %v3382_v38  ;;  %v552_v30 = vrot.slane %v539_v27, %v3391_v54  ;;  %v548_v31 = vrot.slane %v539_v27, %v3387_v40 }
 0x195   :  { %2188 = vmatpush1.bf16.msra.mxu0 %v2968_v32  ;;  %2274 = vmatpush1.bf16.msra.mxu1 %v2971_v33  ;;  %v556_v32 = vrot.slane %v539_v27, %v3393_v56  ;;  %v3087_v27 = vld [vmem:[#allocation8 + $0x2ac] ss:$16 sps:$4 sm:$0xff]  }
 0x196   :  { %2189 = vmatprep.subr.bf16.mxu0 %v2976_v34  ;;  %2275 = vmatprep.subr.bf16.mxu1 %v2979_v35 }
 0x199   :  { %2190 = vmatpush1.bf16.msra.mxu0 %v2974_v36  ;;  %2276 = vmatpush1.bf16.msra.mxu1 %v2977_v29 }
 0x19a   :  { %2191 = vmatprep.subr.bf16.mxu0 %v2982_v37  ;;  %2277 = vmatprep.subr.bf16.mxu1 %v2985_v39 }
 0x19d   :  { %2192 = vmatpush1.bf16.msra.mxu0 %v2980_v41  ;;  %2278 = vmatpush1.bf16.msra.mxu1 %v2983_v42 }
 0x19e   :  { %2193 = vmatprep.subr.bf16.mxu0 %v2988_v43  ;;  %2279 = vmatprep.subr.bf16.mxu1 %v2991_v44 }
 0x1a1   :  { %2194 = vmatpush1.bf16.msra.mxu0 %v2986_v45  ;;  %2280 = vmatpush1.bf16.msra.mxu1 %v2989_v46 }
 0x1a2   :  { %2195 = vmatprep.subr.bf16.mxu0 %v2994_v47  ;;  %2281 = vmatprep.subr.bf16.mxu1 %v2997_v48 }
 0x1a5   :  { %2196 = vmatpush1.bf16.msra.mxu0 %v2992_v49  ;;  %2282 = vmatpush1.bf16.msra.mxu1 %v2995_v50 }
 0x1a6   :  { %2197 = vmatprep.subr.bf16.mxu0 %v3000_v51  ;;  %2283 = vmatprep.subr.bf16.mxu1 %v3003_v52 }
 0x1a9   :  { %2198 = vmatpush1.bf16.msra.mxu0 %v2998_v53  ;;  %2284 = vmatpush1.bf16.msra.mxu1 %v3001_v55 }
 0x1aa   :  { %2199 = vmatprep.subr.bf16.mxu0 %v3006_v57  ;;  %2285 = vmatprep.subr.bf16.mxu1 %v3009_v58 }
 0x1ad   :  { %2200 = vmatpush1.bf16.msra.mxu0 %v3004_v59  ;;  %2286 = vmatpush1.bf16.msra.mxu1 %v3007_v60 }
 0x1ae   :  { %2201 = vmatprep.subr.bf16.mxu0 %v3012_v61  ;;  %2287 = vmatprep.subr.bf16.mxu1 %v3015_v62 }
 0x1b1   :  { %2202 = vmatpush1.bf16.msra.mxu0 %v3010_v63  ;;  %2288 = vmatpush1.bf16.msra.mxu1 %v3013_v0 }
 0x1b2   :  { %2203 = vmatprep.subr.bf16.mxu0 %v3018_v1  ;;  %2289 = vmatprep.subr.bf16.mxu1 %v3021_v2 }
 0x1b5   :  { %2204 = vmatpush1.bf16.msra.mxu0 %v3016_v3  ;;  %2290 = vmatpush1.bf16.msra.mxu1 %v3019_v4 }
 0x1b6   :  { %2205 = vmatprep.subr.bf16.mxu0 %v3024_v5  ;;  %2291 = vmatprep.subr.bf16.mxu1 %v3027_v6 }
 0x1b9   :  { %2206 = vmatpush1.bf16.msra.mxu0 %v3022_v7  ;;  %2292 = vmatpush1.bf16.msra.mxu1 %v3025_v8  ;;  %v3052_v7 = vld [vmem:[#allocation8 + $0x200] ss:$16 sps:$4 sm:$0xff]   ;;  %v3055_v8 = vld [vmem:[#allocation8 + $0x208] ss:$16 sps:$4 sm:$0xff]  }
 0x1ba   :  { %2207 = vmatprep.subr.bf16.mxu0 %v3030_v9  ;;  %2293 = vmatprep.subr.bf16.mxu1 %v3033_v10  ;;  %v3060_v10 = vld [vmem:[#allocation8 + $0x224] ss:$16 sps:$4 sm:$0xff]  }
 0x1bd   :  { %2208 = vmatpush1.bf16.msra.mxu0 %v3028_v11  ;;  %2294 = vmatpush1.bf16.msra.mxu1 %v3031_v12  ;;  %v3063_v11 = vld [vmem:[#allocation8 + $0x22c] ss:$16 sps:$4 sm:$0xff]   ;;  %v3058_v12 = vld [vmem:[#allocation8 + $0x220] ss:$16 sps:$4 sm:$0xff]  }
 0x1be   :  { %2209 = vmatprep.subr.bf16.mxu0 %v3036_v13  ;;  %2295 = vmatprep.subr.bf16.mxu1 %v3039_v14  ;;  %v3061_v13 = vld [vmem:[#allocation8 + $0x228] ss:$16 sps:$4 sm:$0xff]   ;;  %v3066_v14 = vld [vmem:[#allocation8 + $0x244] ss:$16 sps:$4 sm:$0xff]  }
 0x1c1   :  { %2210 = vmatpush1.bf16.msra.mxu0 %v3034_v15  ;;  %2296 = vmatpush1.bf16.msra.mxu1 %v3037_v16  ;;  %v3069_v15 = vld [vmem:[#allocation8 + $0x24c] ss:$16 sps:$4 sm:$0xff]   ;;  %v3064_v16 = vld [vmem:[#allocation8 + $0x240] ss:$16 sps:$4 sm:$0xff]  }
 0x1c2   :  { %2211 = vmatprep.subr.bf16.mxu0 %v3042_v17  ;;  %2297 = vmatprep.subr.bf16.mxu1 %v3045_v18  ;;  %v3067_v17 = vld [vmem:[#allocation8 + $0x248] ss:$16 sps:$4 sm:$0xff]   ;;  %v3072_v18 = vld [vmem:[#allocation8 + $0x264] ss:$16 sps:$4 sm:$0xff]  }
 0x1c5   :  { %2212 = vmatpush1.bf16.msra.mxu0 %v3040_v19  ;;  %2298 = vmatpush1.bf16.msra.mxu1 %v3043_v20  ;;  %v3075_v19 = vld [vmem:[#allocation8 + $0x26c] ss:$16 sps:$4 sm:$0xff]   ;;  %v3070_v20 = vld [vmem:[#allocation8 + $0x260] ss:$16 sps:$4 sm:$0xff]  }
 0x1c6   :  { %2213 = vmatprep.subr.bf16.mxu0 %v3048_v21  ;;  %2299 = vmatprep.subr.bf16.mxu1 %v3051_v22  ;;  %v3073_v21 = vld [vmem:[#allocation8 + $0x268] ss:$16 sps:$4 sm:$0xff]   ;;  %v3078_v22 = vld [vmem:[#allocation8 + $0x284] ss:$16 sps:$4 sm:$0xff]  }
 0x1c9   :  { %2214 = vmatpush1.bf16.msra.mxu0 %v3046_v23  ;;  %2300 = vmatpush1.bf16.msra.mxu1 %v3049_v24  ;;  %v3081_v23 = vld [vmem:[#allocation8 + $0x28c] ss:$16 sps:$4 sm:$0xff]   ;;  %v3076_v24 = vld [vmem:[#allocation8 + $0x280] ss:$16 sps:$4 sm:$0xff]  }
 0x1ca   :  { %2226 = vmatprep.subr.bf16.mxu0 %v3054_v25  ;;  %2312 = vmatprep.subr.bf16.mxu1 %v3057_v26  ;;  %v3079_v25 = vld [vmem:[#allocation8 + $0x288] ss:$16 sps:$4 sm:$0xff]   ;;  %v3084_v26 = vld [vmem:[#allocation8 + $0x2a4] ss:$16 sps:$4 sm:$0xff]  }
 0x25f   :  { %v1278_v33 = vpop.f32.mrb[4].mxu0  ;;  %v1364_v34 = vpop.f32.mrb[4].mxu1 }
 0x260   :  { %v2671_v35 = vadd.f32 %v1278_v33, %v544_v28  ;;  %v2675_v36 = vadd.f32 %v1364_v34, %v552_v30  ;;  %v1280_v29 = vpop.f32.mrb[5].mxu0  ;;  %v1366_v37 = vpop.f32.mrb[5].mxu1  ;;  %v3088_v33 = vld [vmem:[#allocation8 + $0x2c0] ss:$16 sps:$4 sm:$0xff]   ;;  %v3091_v34 = vld [vmem:[#allocation8 + $0x2c8] ss:$16 sps:$4 sm:$0xff]  }
 0x261   :  { %v2672_v39 = vadd.f32 %v1280_v29, %v548_v31  ;;  %v2676_v41 = vadd.f32 %v1366_v37, %v556_v32  ;;  %v1282_v42 = vpop.f32.mrb[6].mxu0  ;;  %v1368_v43 = vpop.f32.mrb[6].mxu1  ;;  %v3094_v29 = vld [vmem:[#allocation8 + $0x2e0] ss:$16 sps:$4 sm:$0xff]   ;;  %v3097_v37 = vld [vmem:[#allocation8 + $0x2e8] ss:$16 sps:$4 sm:$0xff]  }
 0x262   :  { %v1373_v44 = vmul.f32 0.2, %v2671_v35  ;;  %v1375_v45 = vmul.f32 0.2, %v2675_v36  ;;  %v2673_v46 = vadd.f32 %v1282_v42, %v544_v28  ;;  %v2677_v47 = vadd.f32 %v1368_v43, %v552_v30  ;;  %v1284_v48 = vpop.f32.mrb[7].mxu0  ;;  %v1370_v49 = vpop.f32.mrb[7].mxu1 }
 0x263   :  { %v1374_v50 = vmul.f32 0.2, %v2672_v39  ;;  %v1376_v51 = vmul.f32 0.2, %v2676_v41  ;;  %v2674_v52 = vadd.f32 %v1284_v48, %v548_v31  ;;  %v2678_v53 = vadd.f32 %v1370_v49, %v556_v32  ;;  %v3082_v28 = vld [vmem:[#allocation8 + $0x2a0] ss:$16 sps:$4 sm:$0xff]  }
 0x264   :  { %v1377_v55 = vmul.f32 0.2, %v2673_v46  ;;  %v1379_v57 = vmul.f32 0.2, %v2677_v47  ;;  %v1381_v60 = vmax.f32 %v2671_v35, %v1373_v44  ;;  %v1383_v61 = vmax.f32 %v2675_v36, %v1375_v45  ;;  %v3085_v30 = vld [vmem:[#allocation8 + $0x2a8] ss:$16 sps:$4 sm:$0xff]  }
 0x265   :  { %v1378_v58 = vmul.f32 0.2, %v2674_v52  ;;  %v1380_v59 = vmul.f32 0.2, %v2678_v53  ;;  %v1382_v0 = vmax.f32 %v2672_v39, %v1374_v50  ;;  %v1384_v1 = vmax.f32 %v2676_v41, %v1376_v51  ;;  %v3090_v31 = vld [vmem:[#allocation8 + $0x2c4] ss:$16 sps:$4 sm:$0xff]  }
 0x266   :  { %v1385_v62 = vmax.f32 %v2673_v46, %v1377_v55  ;;  %v1387_v63 = vmax.f32 %v2677_v47, %v1379_v57  ;;  %v3093_v32 = vld [vmem:[#allocation8 + $0x2cc] ss:$16 sps:$4 sm:$0xff]   ;;  %v3096_v35 = vld [vmem:[#allocation8 + $0x2e4] ss:$16 sps:$4 sm:$0xff]   ;;  %v3100_v42 = vld [vmem:[#allocation8 + $0x300] ss:$16 sps:$4 sm:$0xff]  }
 0x267   :  { %v1386_v2 = vmax.f32 %v2674_v52, %v1378_v58  ;;  %v1388_v3 = vmax.f32 %v2678_v53, %v1380_v59  ;;  %v3099_v36 = vld [vmem:[#allocation8 + $0x2ec] ss:$16 sps:$4 sm:$0xff]   ;;  %v3102_v39 = vld [vmem:[#allocation8 + $0x304] ss:$16 sps:$4 sm:$0xff]   ;;  %v3103_v43 = vld [vmem:[#allocation8 + $0x308] ss:$16 sps:$4 sm:$0xff]  }
 0x268   :  { %v1389_v4 = vpack.c.bf16 %v1385_v62, %v1381_v60  ;;  %v3408_v5 = vpack.c.bf16 %v1387_v63, %v1383_v61  ;;  %v3105_v41 = vld [vmem:[#allocation8 + $0x30c] ss:$16 sps:$4 sm:$0xff]   ;;  %v3108_v44 = vld [vmem:[#allocation8 + $0x324] ss:$16 sps:$4 sm:$0xff]   ;;  %v3106_v46 = vld [vmem:[#allocation8 + $0x320] ss:$16 sps:$4 sm:$0xff]  }
 0x269   :  { %v1390_v6 = vpack.c.bf16 %v1386_v2, %v1382_v0  ;;  %v1392_v9 = vpack.c.bf16 %v1388_v3, %v1384_v1  ;;  %v3111_v45 = vld [vmem:[#allocation8 + $0x32c] ss:$16 sps:$4 sm:$0xff]   ;;  %v3109_v47 = vld [vmem:[#allocation8 + $0x328] ss:$16 sps:$4 sm:$0xff]   ;;  %v3114_v48 = vld [vmem:[#allocation8 + $0x344] ss:$16 sps:$4 sm:$0xff]  }
 0x26a   :  { %v3117_v49 = vld [vmem:[#allocation8 + $0x34c] ss:$16 sps:$4 sm:$0xff]   ;;  %v3112_v50 = vld [vmem:[#allocation8 + $0x340] ss:$16 sps:$4 sm:$0xff]   ;;  %v3115_v51 = vld [vmem:[#allocation8 + $0x348] ss:$16 sps:$4 sm:$0xff]  }
 0x26b   :  { %2215 = vmatprep.mubr.bf16.mxu0 %v1390_v6  ;;  %2301 = vmatprep.mubr.bf16.mxu1 %v1390_v6  ;;  %v3120_v52 = vld [vmem:[#allocation8 + $0x364] ss:$16 sps:$4 sm:$0xff]   ;;  %v3123_v53 = vld [vmem:[#allocation8 + $0x36c] ss:$16 sps:$4 sm:$0xff]   ;;  %v3118_v55 = vld [vmem:[#allocation8 + $0x360] ss:$16 sps:$4 sm:$0xff]  }
 0x26c   :  { %2216 = vmatmul.mubr.bf16.vlgmr.msra.gmra.mrb[8].mxu0 %v1389_v4  ;;  %2302 = vmatmul.mubr.bf16.vlgmr.msra.gmra.mrb[8].mxu1 %v1389_v4  ;;  %v3121_v57 = vld [vmem:[#allocation8 + $0x368] ss:$16 sps:$4 sm:$0xff]   ;;  %v3126_v58 = vld [vmem:[#allocation8 + $0x384] ss:$16 sps:$4 sm:$0xff]   ;;  %v3129_v59 = vld [vmem:[#allocation8 + $0x38c] ss:$16 sps:$4 sm:$0xff]  }
 0x26d   :  { %2227 = vmatpush1.bf16.msra.mxu0 %v3052_v7  ;;  %2313 = vmatpush1.bf16.msra.mxu1 %v3055_v8  ;;  %v3124_v60 = vld [vmem:[#allocation8 + $0x380] ss:$16 sps:$4 sm:$0xff]   ;;  %v3127_v61 = vld [vmem:[#allocation8 + $0x388] ss:$16 sps:$4 sm:$0xff]   ;;  %v3132_v62 = vld [vmem:[#allocation8 + $0x3a4] ss:$16 sps:$4 sm:$0xff]  }
 0x26e   :  { %2258 = vmatprep.mubr.bf16.mxu0 %v1392_v9  ;;  %2344 = vmatprep.mubr.bf16.mxu1 %v1392_v9  ;;  %v3135_v63 = vld [vmem:[#allocation8 + $0x3ac] ss:$16 sps:$4 sm:$0xff]   ;;  %v3130_v0 = vld [vmem:[#allocation8 + $0x3a0] ss:$16 sps:$4 sm:$0xff]   ;;  %v3133_v1 = vld [vmem:[#allocation8 + $0x3a8] ss:$16 sps:$4 sm:$0xff]  }
 0x26f   :  { %2228 = vmatprep.subr.bf16.mxu0 %v3060_v10  ;;  %2314 = vmatprep.subr.bf16.mxu1 %v3063_v11  ;;  %v3138_v2 = vld [vmem:[#allocation8 + $0x3c4] ss:$16 sps:$4 sm:$0xff]   ;;  %v3141_v3 = vld [vmem:[#allocation8 + $0x3cc] ss:$16 sps:$4 sm:$0xff]   ;;  %v3136_v4 = vld [vmem:[#allocation8 + $0x3c0] ss:$16 sps:$4 sm:$0xff]  }
 0x270   :  { %v3139_v6 = vld [vmem:[#allocation8 + $0x3c8] ss:$16 sps:$4 sm:$0xff]   ;;  %v3144_v7 = vld [vmem:[#allocation8 + $0x3e4] ss:$16 sps:$4 sm:$0xff]   ;;  %v3147_v8 = vld [vmem:[#allocation8 + $0x3ec] ss:$16 sps:$4 sm:$0xff]  }
 0x271   :  { %2229 = vmatpush1.bf16.msra.mxu0 %v3058_v12  ;;  %2315 = vmatpush1.bf16.msra.mxu1 %v3061_v13  ;;  %v3142_v9 = vld [vmem:[#allocation8 + $0x3e0] ss:$16 sps:$4 sm:$0xff]   ;;  %v3145_v10 = vld [vmem:[#allocation8 + $0x3e8] ss:$16 sps:$4 sm:$0xff]  }
 0x272   :  { %2230 = vmatprep.subr.bf16.mxu0 %v3066_v14  ;;  %2316 = vmatprep.subr.bf16.mxu1 %v3069_v15  ;;  %v1521_v11 = vld [vmem:[%s3437_s6] sm:$0xf]  ;;  %s3236_s6 = scalar_lea.vmem %s2369_s30, 1024 }
 0x273   :  { %v1526_v12 = vrot.slane %v1521_v11, %v3382_v38  ;;  %v1534_v13 = vrot.slane %v1521_v11, %v3391_v54  ;;  %v1530_v14 = vrot.slane %v1521_v11, %v3387_v40  ;;  %v1538_v15 = vrot.slane %v1521_v11, %v3393_v56  ;;  %p3237_p4 = scmp.ne.s32.totalorder %s2369_s30, %s3236_s6  ;;  %p3242_p6 = scmp.lt.s32.totalorder %s3236_s6, %s3236_s6 }
 0x275   :  { %2231 = vmatpush1.bf16.msra.mxu0 %v3064_v16  ;;  %2317 = vmatpush1.bf16.msra.mxu1 %v3067_v17  ;;  %p3243_p7 = por %p3242_p6, %p3241_p5 }
 0x276   :  { %2232 = vmatprep.subr.bf16.mxu0 %v3072_v18  ;;  %2318 = vmatprep.subr.bf16.mxu1 %v3075_v19 }
 0x277   :  { %p3244_p8 = pnand %p3243_p7, %p3237_p4 }
 0x279   :  { %2233 = vmatpush1.bf16.msra.mxu0 %v3070_v20  ;;  %2319 = vmatpush1.bf16.msra.mxu1 %v3073_v21 }
 0x27a   :  { %2234 = vmatprep.subr.bf16.mxu0 %v3078_v22  ;;  %2320 = vmatprep.subr.bf16.mxu1 %v3081_v23 }
 0x27d   :  { %2235 = vmatpush1.bf16.msra.mxu0 %v3076_v24  ;;  %2321 = vmatpush1.bf16.msra.mxu1 %v3079_v25 }
 0x27e   :  { %2236 = vmatprep.subr.bf16.mxu0 %v3084_v26  ;;  %2322 = vmatprep.subr.bf16.mxu1 %v3087_v27 }
 0x281   :  { %2237 = vmatpush1.bf16.msra.mxu0 %v3082_v28  ;;  %2323 = vmatpush1.bf16.msra.mxu1 %v3085_v30 }
 0x282   :  { %2238 = vmatprep.subr.bf16.mxu0 %v3090_v31  ;;  %2324 = vmatprep.subr.bf16.mxu1 %v3093_v32 }
 0x285   :  { %2239 = vmatpush1.bf16.msra.mxu0 %v3088_v33  ;;  %2325 = vmatpush1.bf16.msra.mxu1 %v3091_v34 }
 0x286   :  { %2240 = vmatprep.subr.bf16.mxu0 %v3096_v35  ;;  %2326 = vmatprep.subr.bf16.mxu1 %v3099_v36 }
 0x289   :  { %2241 = vmatpush1.bf16.msra.mxu0 %v3094_v29  ;;  %2327 = vmatpush1.bf16.msra.mxu1 %v3097_v37 }
 0x28a   :  { %2242 = vmatprep.subr.bf16.mxu0 %v3102_v39  ;;  %2328 = vmatprep.subr.bf16.mxu1 %v3105_v41 }
 0x28d   :  { %2243 = vmatpush1.bf16.msra.mxu0 %v3100_v42  ;;  %2329 = vmatpush1.bf16.msra.mxu1 %v3103_v43 }
 0x28e   :  { %2244 = vmatprep.subr.bf16.mxu0 %v3108_v44  ;;  %2330 = vmatprep.subr.bf16.mxu1 %v3111_v45 }
 0x291   :  { %2245 = vmatpush1.bf16.msra.mxu0 %v3106_v46  ;;  %2331 = vmatpush1.bf16.msra.mxu1 %v3109_v47 }
 0x292   :  { %2246 = vmatprep.subr.bf16.mxu0 %v3114_v48  ;;  %2332 = vmatprep.subr.bf16.mxu1 %v3117_v49 }
 0x295   :  { %2247 = vmatpush1.bf16.msra.mxu0 %v3112_v50  ;;  %2333 = vmatpush1.bf16.msra.mxu1 %v3115_v51 }
 0x296   :  { %2248 = vmatprep.subr.bf16.mxu0 %v3120_v52  ;;  %2334 = vmatprep.subr.bf16.mxu1 %v3123_v53 }
 0x299   :  { %2249 = vmatpush1.bf16.msra.mxu0 %v3118_v55  ;;  %2335 = vmatpush1.bf16.msra.mxu1 %v3121_v57 }
 0x29a   :  { %2250 = vmatprep.subr.bf16.mxu0 %v3126_v58  ;;  %2336 = vmatprep.subr.bf16.mxu1 %v3129_v59 }
 0x29d   :  { %2251 = vmatpush1.bf16.msra.mxu0 %v3124_v60  ;;  %2337 = vmatpush1.bf16.msra.mxu1 %v3127_v61 }
 0x29e   :  { %2252 = vmatprep.subr.bf16.mxu0 %v3132_v62  ;;  %2338 = vmatprep.subr.bf16.mxu1 %v3135_v63 }
 0x2a1   :  { %2253 = vmatpush1.bf16.msra.mxu0 %v3130_v0  ;;  %2339 = vmatpush1.bf16.msra.mxu1 %v3133_v1 }
 0x2a2   :  { %2254 = vmatprep.subr.bf16.mxu0 %v3138_v2  ;;  %2340 = vmatprep.subr.bf16.mxu1 %v3141_v3 }
 0x2a5   :  { %2255 = vmatpush1.bf16.msra.mxu0 %v3136_v4  ;;  %2341 = vmatpush1.bf16.msra.mxu1 %v3139_v6 }
 0x2a6   :  { %2256 = vmatprep.subr.bf16.mxu0 %v3144_v7  ;;  %2342 = vmatprep.subr.bf16.mxu1 %v3147_v8 }
 0x2a9   :  { %2257 = vmatpush1.bf16.msra.mxu0 %v3142_v9  ;;  %2343 = vmatpush1.bf16.msra.mxu1 %v3145_v10 }
 0x2ac   :  { %2259 = vmatmul.mubr.bf16.vlgmr.msra.gmra.mrb[8].mxu0 %v3408_v5  ;;  %2345 = vmatmul.mubr.bf16.vlgmr.msra.gmra.mrb[8].mxu1 %v3408_v5 }
 0x37f   :  { %v2260_v16 = vpop.f32.mrb[8].mxu0  ;;  %v2346_v17 = vpop.f32.mrb[8].mxu1 }
 0x380   :  { %v2679_v18 = vadd.f32 %v2260_v16, %v1526_v12  ;;  %v2683_v19 = vadd.f32 %v2346_v17, %v1534_v13  ;;  %v2262_v20 = vpop.f32.mrb[9].mxu0  ;;  %v2348_v5 = vpop.f32.mrb[9].mxu1 }
 0x381   :  { %v2680_v21 = vadd.f32 %v2262_v20, %v1530_v14  ;;  %v2684_v22 = vadd.f32 %v2348_v5, %v1538_v15  ;;  %v2264_v23 = vpop.f32.mrb[10].mxu0  ;;  %v2350_v24 = vpop.f32.mrb[10].mxu1 }
 0x382   :  { %2355 = vst [vmem:[#allocation10] sm:$0xff] %v2679_v18  ;;  %2357 = vst [vmem:[#allocation10 + $0x10] sm:$0xff] %v2683_v19  ;;  %v2681_v38 = vadd.f32 %v2264_v23, %v1526_v12  ;;  %v2685_v54 = vadd.f32 %v2350_v24, %v1534_v13  ;;  %v2266_v25 = vpop.f32.mrb[11].mxu0  ;;  %v2352_v40 = vpop.f32.mrb[11].mxu1 }
 0x383   :  { %2356 = vst [vmem:[#allocation10 + $0x8] sm:$0xff] %v2680_v21  ;;  %2358 = vst [vmem:[#allocation10 + $0x18] sm:$0xff] %v2684_v22  ;;  %v2682_v56 = vadd.f32 %v2266_v25, %v1530_v14  ;;  %v2686_v26 = vadd.f32 %v2352_v40, %v1538_v15 }
 0x384   :  { %2359 = vst [vmem:[#allocation10 + $0x20] sm:$0xff] %v2681_v38  ;;  %2361 = vst [vmem:[#allocation10 + $0x30] sm:$0xff] %v2685_v54 }
 0x385   :  { %2360 = vst [vmem:[#allocation10 + $0x28] sm:$0xff] %v2682_v56  ;;  %2362 = vst [vmem:[#allocation10 + $0x38] sm:$0xff] %v2686_v26 }
 0x386   :  { %3247 = shalt.err (!%p3244_p8)
}
 0x387   :  { %s3248_s10 = scalar_lea.hbm %s3438_s7, 1024 }
 0x388   :  { %p3249_p9 = scmp.ne.s32.totalorder %s3438_s7, %s3248_s10  ;;  %p3252_p10 = scmp.lt.u32.totalorder %s3248_s10, %s3438_s7 }
 0x38a   :  { %p3254_p11 = pnand %p3252_p10, %p3249_p9 }
 0x38c   :  { %3257 = shalt.err (!%p3254_p11)
}
 0x38d   :  { %s3276_s18 = smov 512   ;;  %s3277_s0 = smov 32  }
 0x38e   :  { %2374 = dma.vmem_to_hbm [thread:$0]  %s2369_s30, 1024, %s3438_s7, [#allocation4], %s3276_s18, %s3276_s18, %s3277_s0  }
 0x38f   :  { %3264 = dma.done.wait [#allocation4], 1024  }
 0x390   :  { %3265 = vsyncadd [#allocation4], 4294966272 }
 0x391   :  { %2378 = vsyncpa [#allocation3], 1 }
 0x392   :  { %2379 = vsyncpa [#allocation6], 1 }
 0x393   :  { %2380 = vsyncpa [#allocation9], 1 }
 0x394   :  { %2381 = vsyncpa [#allocation4], 1 }

</bundles_post_ra>
